<compile_context>
chip_gen: v7x
topology: tpu7x:2x2x1
jax: 0.10.0
libtpu: 0.0.40
codegen_flags: <defaults>
</compile_context>

<pallas_src>
import functools
import math

import numpy as np
import jax
import jax.numpy as jnp
from jax.experimental import pallas as pl
from jax.experimental.pallas import tpu as pltpu


# ------------------------- fused GraphEncoder kernel -------------------------
def graph_encoder_kernel(x_ref, adjf_ref, gq_ref, w_rgcn_ref, w_qkv_ref, wo_ref,
                         bias_ref, node_out_ref, agg_out_ref,
                         *, num_layers, num_relations, num_heads, emb_dim):
    N = x_ref.shape[1]
    EP = x_ref.shape[2]
    L, R, H, E = num_layers, num_relations, num_heads, emb_dim
    dh = E // H

    x = x_ref[0]                       # (N, EP)   node features, resident in VMEM
    adjf = adjf_ref[0]                 # (R*N, N)  flattened per-relation adjacency

    # ---------------- RGCN stack (x never leaves VMEM between layers) --------
    for l in range(L):
        # one aggregation matmul for ALL relations: (R*N, N) @ (N, EP)
        agg = jnp.dot(adjf, x, preferred_element_type=jnp.float32)      # (R*N, EP)
        # root projection + per-relation projections on copy-free row-block
        # slices of agg (no lane concatenate), each with K = EP (full MXU fill).
        out = jnp.dot(x, w_rgcn_ref[l, 0:EP, :],
                      preferred_element_type=jnp.float32)
        for r in range(R):
            out = out + jnp.dot(agg[r * N:(r + 1) * N, :],
                                w_rgcn_ref[l, (r + 1) * EP:(r + 2) * EP, :],
                                preferred_element_type=jnp.float32)
        x = out + bias_ref[l:l + 1, :]
        if l != L - 1:
            # ReLU between layers (not after the last); dropout in eval = identity
            x = jnp.maximum(x, 0.0)
    node_out_ref[0] = x

    # ---------- MHA resampler: full-width projections, per-head attention ----
    # Wq already carries the 1/sqrt(dh) scale (folded on the host).
    q = gq_ref[...]                                                     # (PP, EP)
    Q = jnp.dot(q, w_qkv_ref[0],
                preferred_element_type=jnp.float32) + bias_ref[L:L + 1, :]
    K = jnp.dot(x, w_qkv_ref[1],
                preferred_element_type=jnp.float32) + bias_ref[L + 1:L + 2, :]
    V = jnp.dot(x, w_qkv_ref[2],
                preferred_element_type=jnp.float32) + bias_ref[L + 2:L + 3, :]

    ctx_heads = []
    for h in range(H):
        lo, hi = h * dh, (h + 1) * dh
        s = jax.lax.dot_general(Q[:, lo:hi], K[:, lo:hi],
                                (((1,), (1,)), ((), ())),
                                preferred_element_type=jnp.float32)      # (PP, N)
        s = s - jnp.max(s, axis=-1, keepdims=True)
        p = jnp.exp(s)
        # normalization on the EUP, applied AFTER p @ V (scales (PP,dh) not (PP,N))
        inv = pl.reciprocal(jnp.sum(p, axis=-1, keepdims=True), approx=True)
        ctx_heads.append(jnp.dot(p, V[:, lo:hi],
                                 preferred_element_type=jnp.float32) * inv)

    ctx = jnp.concatenate(ctx_heads, axis=-1)                            # (PP, E)
    # merged output projection: single K=E matmul, full lane-width output
    agg_out_ref[0] = (jnp.dot(ctx, wo_ref[...],
                              preferred_element_type=jnp.float32)
                      + bias_ref[L + 3:L + 4, :])


def graph_encoder_forward(x, adj, gprompt, w_rel, w_root, b_rgcn, mha, *, num_heads):
    """x: (B,N,E) node embeddings; adj: (B,R,N,N) normalized dense adjacency;
       gprompt: (P,E). Returns (node_embeddings (B,N,E), agg_embeddings (B,P,E))."""
    B, N, E = x.shape
    R = adj.shape[1]
    L = w_root.shape[0]
    P = gprompt.shape[0]
    H = num_heads
    dh = E // H

    # ---- lane/sublane-dense padding (E -> EP multiple of 128, P -> mult of 8)
    EP = ((E + 127) // 128) * 128
    PP = ((P + 7) // 8) * 8
    pad_e = EP - E
    pad_p = PP - P

    def pad_last(a):
        return jnp.pad(a, [(0, 0)] * (a.ndim - 1) + [(0, pad_e)])

    def pad_mat(w):                       # (E,E) -> (EP,EP), zero rows/cols
        return jnp.pad(w, ((0, pad_e), (0, pad_e)))

    x_p = pad_last(x)                                         # (B, N, EP)
    gq_p = jnp.pad(gprompt, ((0, pad_p), (0, pad_e)))         # (PP, EP)
    adj_flat = adj.reshape(B, R * N, N)                       # (B, R*N, N)

    # prestacked RGCN projection: rows = [W_root | W_rel_0 | ... | W_rel_{R-1}]
    w_rgcn = jnp.stack(
        [jnp.concatenate([pad_mat(w_root[l])]
                         + [pad_mat(w_rel[l, r]) for r in range(R)], axis=0)
         for l in range(L)], axis=0)                          # (L, (R+1)*EP, EP)

    # full-width MHA projections; 1/sqrt(dh) folded into Wq / bq on the host
    scale = 1.0 / math.sqrt(dh)
    w_qkv = jnp.stack([pad_mat(mha["wq"]) * scale,
                       pad_mat(mha["wk"]),
                       pad_mat(mha["wv"])], axis=0)           # (3, EP, EP)
    wo_p = jnp.pad(mha["wo"], ((0, 0), (0, pad_e)))           # (E, EP)

    # all biases collapsed into one lane-dense slab: rows [b_rgcn_0..L-1, bq, bk, bv, bo]
    bias_all = jnp.concatenate(
        [pad_last(b_rgcn).reshape(L, EP),
         pad_last(mha["bq"]) * scale,
         pad_last(mha["bk"]),
         pad_last(mha["bv"]),
         pad_last(mha["bo"])], axis=0)                        # (L+4, EP)

    kernel = functools.partial(graph_encoder_kernel,
                               num_layers=L, num_relations=R,
                               num_heads=H, emb_dim=E)

    node_p, agg_p = pl.pallas_call(
        kernel,
        out_shape=(jax.ShapeDtypeStruct((B, N, EP), jnp.float32),
                   jax.ShapeDtypeStruct((B, PP, EP), jnp.float32)),
        grid=(B,),
        in_specs=[
            pl.BlockSpec((1, N, EP), lambda b: (b, 0, 0)),              # x
            pl.BlockSpec((1, R * N, N), lambda b: (b, 0, 0)),           # adj_flat
            pl.BlockSpec((PP, EP), lambda b: (0, 0)),                   # gprompt
            pl.BlockSpec((L, (R + 1) * EP, EP), lambda b: (0, 0, 0)),   # RGCN weights
            pl.BlockSpec((3, EP, EP), lambda b: (0, 0, 0)),             # Wq/Wk/Wv
            pl.BlockSpec((E, EP), lambda b: (0, 0)),                    # Wo
            pl.BlockSpec((L + 4, EP), lambda b: (0, 0)),                # all biases
        ],
        out_specs=(pl.BlockSpec((1, N, EP), lambda b: (b, 0, 0)),
                   pl.BlockSpec((1, PP, EP), lambda b: (b, 0, 0))),
        compiler_params=pltpu.CompilerParams(
            dimension_semantics=("parallel",)),
    )(x_p, adj_flat, gq_p, w_rgcn, w_qkv, wo_p, bias_all)

    # un-pad back to the logical embedding / prompt sizes
    return node_p[..., :E], agg_p[:, :P, :E]


# ---------------------------------- glue --------------------------------------
def build_dense_adj(edges, types, num_nodes, num_relations):
    """edges[b] = [src_list, dst_list] (PyG edge_index layout), types[b] = rel per edge."""
    B = len(edges)
    adj = np.zeros((B, num_relations, num_nodes, num_nodes), np.float32)
    for b in range(B):
        src, dst = edges[b]
        for s, d, r in zip(src, dst, types[b]):
            adj[b, r, d, s] += 1.0
    deg = adj.sum(axis=-1, keepdims=True)                          # in-degree per relation
    adj = np.where(deg > 0, adj / np.maximum(deg, 1.0), 0.0)       # mean aggregation
    return jnp.asarray(adj, jnp.float32)


# ----------------------------- pure-JAX reference ------------------------------
def rgcn_ref(x, adj, w_rel, w_root, bias, relu):
    out = jnp.einsum("bne,ef->bnf", x, w_root)
    out = out + jnp.einsum("brnm,bme,ref->bnf", adj, x, w_rel)
    out = out + bias
    return jnp.maximum(out, 0.0) if relu else out


def mha_ref(q, kv, p, num_heads):
    Q = q @ p["wq"] + p["bq"]
    K = kv @ p["wk"] + p["bk"]
    V = kv @ p["wv"] + p["bv"]
    B, P, E = Q.shape
    N = K.shape[1]
    dh = E // num_heads
    Qh = Q.reshape(B, P, num_heads, dh).transpose(0, 2, 1, 3)
    Kh = K.reshape(B, N, num_heads, dh).transpose(0, 2, 1, 3)
    Vh = V.reshape(B, N, num_heads, dh).transpose(0, 2, 1, 3)
    s = jnp.einsum("bhpd,bhnd->bhpn", Qh, Kh) / math.sqrt(dh)
    a = jax.nn.softmax(s, axis=-1)
    ctx = jnp.einsum("bhpn,bhnd->bhpd", a, Vh).transpose(0, 2, 1, 3).reshape(B, P, E)
    return ctx @ p["wo"] + p["bo"]


# ----------------------------------- main --------------------------------------
if __name__ == "__main__":
    B, N, E = 2, 16, 64          # batch, nodes per graph, embedding size
    R, L = 3, 2                  # num_relations, gnn_layers
    P, H = 10, 8                 # gprompt length, attention heads
    VOCAB = 50                   # total number of KG nodes

    key = jax.random.PRNGKey(0)
    ks = jax.random.split(key, 16)

    # Deterministic parameter init (stands in for the pretrained .npy / module init).
    emb_table = jax.random.normal(ks[0], (VOCAB, E), jnp.float32) * 0.02
    w_rel = jax.random.normal(ks[1], (L, R, E, E), jnp.float32) * (1.0 / math.sqrt(E))
    w_root = jax.random.normal(ks[2], (L, E, E), jnp.float32) * (1.0 / math.sqrt(E))
    b_rgcn = jax.random.normal(ks[3], (L, 1, E), jnp.float32) * 0.01
    gprompt = jax.random.normal(ks[4], (P, E), jnp.float32) * 0.02
    mha_params = {
        "wq": jax.random.normal(ks[5], (E, E), jnp.float32) * (1.0 / math.sqrt(E)),
        "wk": jax.random.normal(ks[6], (E, E), jnp.float32) * (1.0 / math.sqrt(E)),
        "wv": jax.random.normal(ks[7], (E, E), jnp.float32) * (1.0 / math.sqrt(E)),
        "wo": jax.random.normal(ks[8], (E, E), jnp.float32) * (1.0 / math.sqrt(E)),
        "bq": jax.random.normal(ks[9], (1, E), jnp.float32) * 0.01,
        "bk": jax.random.normal(ks[10], (1, E), jnp.float32) * 0.01,
        "bv": jax.random.normal(ks[11], (1, E), jnp.float32) * 0.01,
        "bo": jax.random.normal(ks[12], (1, E), jnp.float32) * 0.01,
    }

    # Inputs: node ids per graph, per-graph edge lists + relation types.
    nodes = jax.random.randint(ks[13], (B, N), 0, VOCAB)
    edges, types = [], []
    for b in range(B):
        src, dst, tp = [], [], []
        for i in range(N):
            src.append(i); dst.append((i + 1 + b) % N); tp.append(i % R)
            src.append(i); dst.append((i + 5) % N); tp.append((i + b) % R)
        edges.append([src, dst]); types.append(tp)
    adj = build_dense_adj(edges, types, N, R)                       # (B, R, N, N)

    # ---------------- forward (single fused Pallas kernel) ----------------
    x = jnp.take(emb_table, nodes, axis=0)                          # (B, N, E) embedding lookup (glue)
    node_embeddings, agg_embeddings = graph_encoder_forward(
        x, adj, gprompt, w_rel, w_root, b_rgcn, mha_params, num_heads=H)
    node_embeddings, agg_embeddings = jax.block_until_ready(
        (node_embeddings, agg_embeddings))

    # ---------------- reference check ----------------
    x_ref = jnp.take(emb_table, nodes, axis=0)
    for l in range(L):
        x_ref = rgcn_ref(x_ref, adj, w_rel[l], w_root[l], b_rgcn[l], relu=(l != L - 1))
    gq = jnp.tile(gprompt[None], (B, 1, 1))                         # gprompt.repeat(B,1,1)
    agg_ref = mha_ref(gq, x_ref, mha_params, H)

    assert node_embeddings.shape == (B, N, E)
    assert agg_embeddings.shape == (B, P, E)
    np.testing.assert_allclose(np.asarray(node_embeddings), np.asarray(x_ref),
                               rtol=2e-3, atol=2e-3)
    np.testing.assert_allclose(np.asarray(agg_embeddings), np.asarray(agg_ref),
                               rtol=2e-3, atol=2e-3)

    print("KERNEL_OK")
</pallas_src>

<mosaic_0001>
module attributes {stable_mosaic.version = 11 : i64} {
  func.func @graph_encoder_kernel(%arg0: i32, %arg1: memref<1x16x128xf32, #tpu.memory_space<vmem>>, %arg2: memref<1x48x16xf32, #tpu.memory_space<vmem>>, %arg3: memref<16x128xf32, #tpu.memory_space<vmem>>, %arg4: memref<2x512x128xf32, #tpu.memory_space<vmem>>, %arg5: memref<3x128x128xf32, #tpu.memory_space<vmem>>, %arg6: memref<64x128xf32, #tpu.memory_space<vmem>>, %arg7: memref<6x128xf32, #tpu.memory_space<vmem>>, %arg8: memref<1x16x128xf32, #tpu.memory_space<vmem>>, %arg9: memref<1x16x128xf32, #tpu.memory_space<vmem>>) attributes {dimension_semantics = [#tpu.dimension_semantics<parallel>], iteration_bounds = array<i64: 2>, scalar_prefetch = 0 : i64, scratch_operands = 0 : i64, tpu.core_type = #tpu.core_type<tc>, window_params = [{transform_indices = @transform_0, window_bounds = array<i64: 1, 16, 128>}, {transform_indices = @transform_1, window_bounds = array<i64: 1, 48, 16>}, {pipeline_mode = #tpu.pipeline_mode<synchronous>, transform_indices = @transform_2, window_bounds = array<i64: 16, 128>}, {pipeline_mode = #tpu.pipeline_mode<synchronous>, transform_indices = @transform_3, window_bounds = array<i64: 2, 512, 128>}, {pipeline_mode = #tpu.pipeline_mode<synchronous>, transform_indices = @transform_4, window_bounds = array<i64: 3, 128, 128>}, {pipeline_mode = #tpu.pipeline_mode<synchronous>, transform_indices = @transform_5, window_bounds = array<i64: 64, 128>}, {pipeline_mode = #tpu.pipeline_mode<synchronous>, transform_indices = @transform_6, window_bounds = array<i64: 6, 128>}, {transform_indices = @transform_7, window_bounds = array<i64: 1, 16, 128>}, {transform_indices = @transform_8, window_bounds = array<i64: 1, 16, 128>}]} {
    %c0 = arith.constant 0 : index
    %c0_0 = arith.constant 0 : index
    %c0_1 = arith.constant 0 : index
    %0 = vector.load %arg1[%c0, %c0_0, %c0_1] : memref<1x16x128xf32, #tpu.memory_space<vmem>>, vector<1x16x128xf32>
    %1 = vector.shape_cast %0 : vector<1x16x128xf32> to vector<16x128xf32>
    %c0_2 = arith.constant 0 : index
    %c0_3 = arith.constant 0 : index
    %c0_4 = arith.constant 0 : index
    %2 = vector.load %arg2[%c0_2, %c0_3, %c0_4] : memref<1x48x16xf32, #tpu.memory_space<vmem>>, vector<1x48x16xf32>
    %3 = vector.shape_cast %2 : vector<1x48x16xf32> to vector<48x16xf32>
    %cst = arith.constant dense<0.000000e+00> : vector<48x128xf32>
    %4 = tpu.matmul %3, %1, %cst {dimension_numbers = #tpu.dot_dimension_numbers<[1], [0], [0], [1], [0, 0, 1, 1], [], []>} : vector<48x16xf32>, vector<16x128xf32>, vector<48x128xf32> -> vector<48x128xf32>
    %c0_5 = arith.constant 0 : index
    %c0_6 = arith.constant 0 : index
    %c0_7 = arith.constant 0 : index
    %5 = vector.load %arg4[%c0_5, %c0_6, %c0_7] : memref<2x512x128xf32, #tpu.memory_space<vmem>>, vector<1x128x128xf32>
    %6 = vector.shape_cast %5 : vector<1x128x128xf32> to vector<128x128xf32>
    %cst_8 = arith.constant dense<0.000000e+00> : vector<16x128xf32>
    %7 = tpu.matmul %1, %6, %cst_8 {dimension_numbers = #tpu.dot_dimension_numbers<[1], [0], [0], [1], [0, 0, 1, 1], [], []>} : vector<16x128xf32>, vector<128x128xf32>, vector<16x128xf32> -> vector<16x128xf32>
    %8 = vector.extract_strided_slice %4 {offsets = [0, 0], sizes = [16, 128], strides = [1, 1]} : vector<48x128xf32> to vector<16x128xf32>
    %c0_9 = arith.constant 0 : index
    %c128 = arith.constant 128 : index
    %c0_10 = arith.constant 0 : index
    %9 = vector.load %arg4[%c0_9, %c128, %c0_10] : memref<2x512x128xf32, #tpu.memory_space<vmem>>, vector<1x128x128xf32>
    %10 = vector.shape_cast %9 : vector<1x128x128xf32> to vector<128x128xf32>
    %cst_11 = arith.constant dense<0.000000e+00> : vector<16x128xf32>
    %11 = tpu.matmul %8, %10, %cst_11 {dimension_numbers = #tpu.dot_dimension_numbers<[1], [0], [0], [1], [0, 0, 1, 1], [], []>} : vector<16x128xf32>, vector<128x128xf32>, vector<16x128xf32> -> vector<16x128xf32>
    %12 = arith.addf %7, %11 : vector<16x128xf32>
    %13 = vector.extract_strided_slice %4 {offsets = [16, 0], sizes = [16, 128], strides = [1, 1]} : vector<48x128xf32> to vector<16x128xf32>
    %c0_12 = arith.constant 0 : index
    %c256 = arith.constant 256 : index
    %c0_13 = arith.constant 0 : index
    %14 = vector.load %arg4[%c0_12, %c256, %c0_13] : memref<2x512x128xf32, #tpu.memory_space<vmem>>, vector<1x128x128xf32>
    %15 = vector.shape_cast %14 : vector<1x128x128xf32> to vector<128x128xf32>
    %cst_14 = arith.constant dense<0.000000e+00> : vector<16x128xf32>
    %16 = tpu.matmul %13, %15, %cst_14 {dimension_numbers = #tpu.dot_dimension_numbers<[1], [0], [0], [1], [0, 0, 1, 1], [], []>} : vector<16x128xf32>, vector<128x128xf32>, vector<16x128xf32> -> vector<16x128xf32>
    %17 = arith.addf %12, %16 : vector<16x128xf32>
    %18 = vector.extract_strided_slice %4 {offsets = [32, 0], sizes = [16, 128], strides = [1, 1]} : vector<48x128xf32> to vector<16x128xf32>
    %c0_15 = arith.constant 0 : index
    %c384 = arith.constant 384 : index
    %c0_16 = arith.constant 0 : index
    %19 = vector.load %arg4[%c0_15, %c384, %c0_16] : memref<2x512x128xf32, #tpu.memory_space<vmem>>, vector<1x128x128xf32>
    %20 = vector.shape_cast %19 : vector<1x128x128xf32> to vector<128x128xf32>
    %cst_17 = arith.constant dense<0.000000e+00> : vector<16x128xf32>
    %21 = tpu.matmul %18, %20, %cst_17 {dimension_numbers = #tpu.dot_dimension_numbers<[1], [0], [0], [1], [0, 0, 1, 1], [], []>} : vector<16x128xf32>, vector<128x128xf32>, vector<16x128xf32> -> vector<16x128xf32>
    %22 = arith.addf %17, %21 : vector<16x128xf32>
    %c0_18 = arith.constant 0 : index
    %c0_19 = arith.constant 0 : index
    %23 = vector.load %arg7[%c0_18, %c0_19] : memref<6x128xf32, #tpu.memory_space<vmem>>, vector<1x128xf32>
    %24 = vector.broadcast %23 : vector<1x128xf32> to vector<16x128xf32>
    %25 = arith.addf %22, %24 : vector<16x128xf32>
    %cst_20 = arith.constant 0.000000e+00 : f32
    %26 = vector.broadcast %cst_20 : f32 to vector<16x128xf32>
    %27 = arith.maximumf %25, %26 : vector<16x128xf32>
    %cst_21 = arith.constant dense<0.000000e+00> : vector<48x128xf32>
    %28 = tpu.matmul %3, %27, %cst_21 {dimension_numbers = #tpu.dot_dimension_numbers<[1], [0], [0], [1], [0, 0, 1, 1], [], []>} : vector<48x16xf32>, vector<16x128xf32>, vector<48x128xf32> -> vector<48x128xf32>
    %c1 = arith.constant 1 : index
    %c0_22 = arith.constant 0 : index
    %c0_23 = arith.constant 0 : index
    %29 = vector.load %arg4[%c1, %c0_22, %c0_23] : memref<2x512x128xf32, #tpu.memory_space<vmem>>, vector<1x128x128xf32>
    %30 = vector.shape_cast %29 : vector<1x128x128xf32> to vector<128x128xf32>
    %cst_24 = arith.constant dense<0.000000e+00> : vector<16x128xf32>
    %31 = tpu.matmul %27, %30, %cst_24 {dimension_numbers = #tpu.dot_dimension_numbers<[1], [0], [0], [1], [0, 0, 1, 1], [], []>} : vector<16x128xf32>, vector<128x128xf32>, vector<16x128xf32> -> vector<16x128xf32>
    %32 = vector.extract_strided_slice %28 {offsets = [0, 0], sizes = [16, 128], strides = [1, 1]} : vector<48x128xf32> to vector<16x128xf32>
    %c1_25 = arith.constant 1 : index
    %c128_26 = arith.constant 128 : index
    %c0_27 = arith.constant 0 : index
    %33 = vector.load %arg4[%c1_25, %c128_26, %c0_27] : memref<2x512x128xf32, #tpu.memory_space<vmem>>, vector<1x128x128xf32>
    %34 = vector.shape_cast %33 : vector<1x128x128xf32> to vector<128x128xf32>
    %cst_28 = arith.constant dense<0.000000e+00> : vector<16x128xf32>
    %35 = tpu.matmul %32, %34, %cst_28 {dimension_numbers = #tpu.dot_dimension_numbers<[1], [0], [0], [1], [0, 0, 1, 1], [], []>} : vector<16x128xf32>, vector<128x128xf32>, vector<16x128xf32> -> vector<16x128xf32>
    %36 = arith.addf %31, %35 : vector<16x128xf32>
    %37 = vector.extract_strided_slice %28 {offsets = [16, 0], sizes = [16, 128], strides = [1, 1]} : vector<48x128xf32> to vector<16x128xf32>
    %c1_29 = arith.constant 1 : index
    %c256_30 = arith.constant 256 : index
    %c0_31 = arith.constant 0 : index
    %38 = vector.load %arg4[%c1_29, %c256_30, %c0_31] : memref<2x512x128xf32, #tpu.memory_space<vmem>>, vector<1x128x128xf32>
    %39 = vector.shape_cast %38 : vector<1x128x128xf32> to vector<128x128xf32>
    %cst_32 = arith.constant dense<0.000000e+00> : vector<16x128xf32>
    %40 = tpu.matmul %37, %39, %cst_32 {dimension_numbers = #tpu.dot_dimension_numbers<[1], [0], [0], [1], [0, 0, 1, 1], [], []>} : vector<16x128xf32>, vector<128x128xf32>, vector<16x128xf32> -> vector<16x128xf32>
    %41 = arith.addf %36, %40 : vector<16x128xf32>
    %42 = vector.extract_strided_slice %28 {offsets = [32, 0], sizes = [16, 128], strides = [1, 1]} : vector<48x128xf32> to vector<16x128xf32>
    %c1_33 = arith.constant 1 : index
    %c384_34 = arith.constant 384 : index
    %c0_35 = arith.constant 0 : index
    %43 = vector.load %arg4[%c1_33, %c384_34, %c0_35] : memref<2x512x128xf32, #tpu.memory_space<vmem>>, vector<1x128x128xf32>
    %44 = vector.shape_cast %43 : vector<1x128x128xf32> to vector<128x128xf32>
    %cst_36 = arith.constant dense<0.000000e+00> : vector<16x128xf32>
    %45 = tpu.matmul %42, %44, %cst_36 {dimension_numbers = #tpu.dot_dimension_numbers<[1], [0], [0], [1], [0, 0, 1, 1], [], []>} : vector<16x128xf32>, vector<128x128xf32>, vector<16x128xf32> -> vector<16x128xf32>
    %46 = arith.addf %41, %45 : vector<16x128xf32>
    %c1_37 = arith.constant 1 : index
    %c0_38 = arith.constant 0 : index
    %47 = vector.load %arg7[%c1_37, %c0_38] : memref<6x128xf32, #tpu.memory_space<vmem>>, vector<1x128xf32>
    %48 = vector.broadcast %47 : vector<1x128xf32> to vector<16x128xf32>
    %49 = arith.addf %46, %48 : vector<16x128xf32>
    %c0_39 = arith.constant 0 : index
    %c0_40 = arith.constant 0 : index
    %c0_41 = arith.constant 0 : index
    %50 = vector.load %arg8[%c0_39, %c0_40, %c0_41] : memref<1x16x128xf32, #tpu.memory_space<vmem>>, vector<1x16x128xf32>
    %51 = vector.shape_cast %50 : vector<1x16x128xf32> to vector<16x128xf32>
    %52 = vector.shape_cast %49 : vector<16x128xf32> to vector<1x16x128xf32>
    tpu.vector_store %arg8[%c0_39, %c0_40, %c0_41], %52 {strides = array<i32>} : memref<1x16x128xf32, #tpu.memory_space<vmem>>, vector<1x16x128xf32>,
    %c0_42 = arith.constant 0 : index
    %c0_43 = arith.constant 0 : index
    %53 = vector.load %arg3[%c0_42, %c0_43] : memref<16x128xf32, #tpu.memory_space<vmem>>, vector<16x128xf32>
    %c0_44 = arith.constant 0 : index
    %c0_45 = arith.constant 0 : index
    %c0_46 = arith.constant 0 : index
    %54 = vector.load %arg5[%c0_44, %c0_45, %c0_46] : memref<3x128x128xf32, #tpu.memory_space<vmem>>, vector<1x128x128xf32>
    %55 = vector.shape_cast %54 : vector<1x128x128xf32> to vector<128x128xf32>
    %cst_47 = arith.constant dense<0.000000e+00> : vector<16x128xf32>
    %56 = tpu.matmul %53, %55, %cst_47 {dimension_numbers = #tpu.dot_dimension_numbers<[1], [0], [0], [1], [0, 0, 1, 1], [], []>} : vector<16x128xf32>, vector<128x128xf32>, vector<16x128xf32> -> vector<16x128xf32>
    %c2 = arith.constant 2 : index
    %c0_48 = arith.constant 0 : index
    %57 = vector.load %arg7[%c2, %c0_48] : memref<6x128xf32, #tpu.memory_space<vmem>>, vector<1x128xf32>
    %58 = vector.broadcast %57 : vector<1x128xf32> to vector<16x128xf32>
    %59 = arith.addf %56, %58 : vector<16x128xf32>
    %c1_49 = arith.constant 1 : index
    %c0_50 = arith.constant 0 : index
    %c0_51 = arith.constant 0 : index
    %60 = vector.load %arg5[%c1_49, %c0_50, %c0_51] : memref<3x128x128xf32, #tpu.memory_space<vmem>>, vector<1x128x128xf32>
    %61 = vector.shape_cast %60 : vector<1x128x128xf32> to vector<128x128xf32>
    %cst_52 = arith.constant dense<0.000000e+00> : vector<16x128xf32>
    %62 = tpu.matmul %49, %61, %cst_52 {dimension_numbers = #tpu.dot_dimension_numbers<[1], [0], [0], [1], [0, 0, 1, 1], [], []>} : vector<16x128xf32>, vector<128x128xf32>, vector<16x128xf32> -> vector<16x128xf32>
    %c3 = arith.constant 3 : index
    %c0_53 = arith.constant 0 : index
    %63 = vector.load %arg7[%c3, %c0_53] : memref<6x128xf32, #tpu.memory_space<vmem>>, vector<1x128xf32>
    %64 = vector.broadcast %63 : vector<1x128xf32> to vector<16x128xf32>
    %65 = arith.addf %62, %64 : vector<16x128xf32>
    %c2_54 = arith.constant 2 : index
    %c0_55 = arith.constant 0 : index
    %c0_56 = arith.constant 0 : index
    %66 = vector.load %arg5[%c2_54, %c0_55, %c0_56] : memref<3x128x128xf32, #tpu.memory_space<vmem>>, vector<1x128x128xf32>
    %67 = vector.shape_cast %66 : vector<1x128x128xf32> to vector<128x128xf32>
    %cst_57 = arith.constant dense<0.000000e+00> : vector<16x128xf32>
    %68 = tpu.matmul %49, %67, %cst_57 {dimension_numbers = #tpu.dot_dimension_numbers<[1], [0], [0], [1], [0, 0, 1, 1], [], []>} : vector<16x128xf32>, vector<128x128xf32>, vector<16x128xf32> -> vector<16x128xf32>
    %c4 = arith.constant 4 : index
    %c0_58 = arith.constant 0 : index
    %69 = vector.load %arg7[%c4, %c0_58] : memref<6x128xf32, #tpu.memory_space<vmem>>, vector<1x128xf32>
    %70 = vector.broadcast %69 : vector<1x128xf32> to vector<16x128xf32>
    %71 = arith.addf %68, %70 : vector<16x128xf32>
    %72 = vector.extract_strided_slice %59 {offsets = [0, 0], sizes = [16, 8], strides = [1, 1]} : vector<16x128xf32> to vector<16x8xf32>
    %73 = vector.extract_strided_slice %65 {offsets = [0, 0], sizes = [16, 8], strides = [1, 1]} : vector<16x128xf32> to vector<16x8xf32>
    %cst_59 = arith.constant dense<0.000000e+00> : vector<16x16xf32>
    %74 = tpu.matmul %72, %73, %cst_59 {dimension_numbers = #tpu.dot_dimension_numbers<[1], [1], [0], [0], [0, 0, 1, 0], [], []>} : vector<16x8xf32>, vector<16x8xf32>, vector<16x16xf32> -> vector<16x16xf32>
    %cst_60 = arith.constant dense<0xFF800000> : vector<16xf32>
    %75 = vector.multi_reduction <maximumf>, %74, %cst_60 [1] : vector<16x16xf32> to vector<16xf32>
    %76 = vector.shape_cast %75 : vector<16xf32> to vector<16x1xf32>
    %77 = vector.broadcast %76 : vector<16x1xf32> to vector<16x16xf32>
    %78 = arith.subf %74, %77 : vector<16x16xf32>
    %79 = math.exp %78 : vector<16x16xf32>
    %cst_61 = arith.constant dense<0.000000e+00> : vector<16xf32>
    %80 = vector.multi_reduction <add>, %79, %cst_61 [1] : vector<16x16xf32> to vector<16xf32>
    %81 = vector.shape_cast %80 : vector<16xf32> to vector<16x1xf32>
    %82 = tpu.reciprocal %81 {approx = true} : vector<16x1xf32> -> vector<16x1xf32>
    %83 = vector.extract_strided_slice %71 {offsets = [0, 0], sizes = [16, 8], strides = [1, 1]} : vector<16x128xf32> to vector<16x8xf32>
    %cst_62 = arith.constant dense<0.000000e+00> : vector<16x8xf32>
    %84 = tpu.matmul %79, %83, %cst_62 {dimension_numbers = #tpu.dot_dimension_numbers<[1], [0], [0], [1], [0, 0, 1, 1], [], []>} : vector<16x16xf32>, vector<16x8xf32>, vector<16x8xf32> -> vector<16x8xf32>
    %85 = vector.broadcast %82 : vector<16x1xf32> to vector<16x8xf32>
    %86 = arith.mulf %84, %85 : vector<16x8xf32>
    %87 = vector.extract_strided_slice %59 {offsets = [0, 8], sizes = [16, 8], strides = [1, 1]} : vector<16x128xf32> to vector<16x8xf32>
    %88 = vector.extract_strided_slice %65 {offsets = [0, 8], sizes = [16, 8], strides = [1, 1]} : vector<16x128xf32> to vector<16x8xf32>
    %cst_63 = arith.constant dense<0.000000e+00> : vector<16x16xf32>
    %89 = tpu.matmul %87, %88, %cst_63 {dimension_numbers = #tpu.dot_dimension_numbers<[1], [1], [0], [0], [0, 0, 1, 0], [], []>} : vector<16x8xf32>, vector<16x8xf32>, vector<16x16xf32> -> vector<16x16xf32>
    %cst_64 = arith.constant dense<0xFF800000> : vector<16xf32>
    %90 = vector.multi_reduction <maximumf>, %89, %cst_64 [1] : vector<16x16xf32> to vector<16xf32>
    %91 = vector.shape_cast %90 : vector<16xf32> to vector<16x1xf32>
    %92 = vector.broadcast %91 : vector<16x1xf32> to vector<16x16xf32>
    %93 = arith.subf %89, %92 : vector<16x16xf32>
    %94 = math.exp %93 : vector<16x16xf32>
    %cst_65 = arith.constant dense<0.000000e+00> : vector<16xf32>
    %95 = vector.multi_reduction <add>, %94, %cst_65 [1] : vector<16x16xf32> to vector<16xf32>
    %96 = vector.shape_cast %95 : vector<16xf32> to vector<16x1xf32>
    %97 = tpu.reciprocal %96 {approx = true} : vector<16x1xf32> -> vector<16x1xf32>
    %98 = vector.extract_strided_slice %71 {offsets = [0, 8], sizes = [16, 8], strides = [1, 1]} : vector<16x128xf32> to vector<16x8xf32>
    %cst_66 = arith.constant dense<0.000000e+00> : vector<16x8xf32>
    %99 = tpu.matmul %94, %98, %cst_66 {dimension_numbers = #tpu.dot_dimension_numbers<[1], [0], [0], [1], [0, 0, 1, 1], [], []>} : vector<16x16xf32>, vector<16x8xf32>, vector<16x8xf32> -> vector<16x8xf32>
    %100 = vector.broadcast %97 : vector<16x1xf32> to vector<16x8xf32>
    %101 = arith.mulf %99, %100 : vector<16x8xf32>
    %102 = vector.extract_strided_slice %59 {offsets = [0, 16], sizes = [16, 8], strides = [1, 1]} : vector<16x128xf32> to vector<16x8xf32>
    %103 = vector.extract_strided_slice %65 {offsets = [0, 16], sizes = [16, 8], strides = [1, 1]} : vector<16x128xf32> to vector<16x8xf32>
    %cst_67 = arith.constant dense<0.000000e+00> : vector<16x16xf32>
    %104 = tpu.matmul %102, %103, %cst_67 {dimension_numbers = #tpu.dot_dimension_numbers<[1], [1], [0], [0], [0, 0, 1, 0], [], []>} : vector<16x8xf32>, vector<16x8xf32>, vector<16x16xf32> -> vector<16x16xf32>
    %cst_68 = arith.constant dense<0xFF800000> : vector<16xf32>
    %105 = vector.multi_reduction <maximumf>, %104, %cst_68 [1] : vector<16x16xf32> to vector<16xf32>
    %106 = vector.shape_cast %105 : vector<16xf32> to vector<16x1xf32>
    %107 = vector.broadcast %106 : vector<16x1xf32> to vector<16x16xf32>
    %108 = arith.subf %104, %107 : vector<16x16xf32>
    %109 = math.exp %108 : vector<16x16xf32>
    %cst_69 = arith.constant dense<0.000000e+00> : vector<16xf32>
    %110 = vector.multi_reduction <add>, %109, %cst_69 [1] : vector<16x16xf32> to vector<16xf32>
    %111 = vector.shape_cast %110 : vector<16xf32> to vector<16x1xf32>
    %112 = tpu.reciprocal %111 {approx = true} : vector<16x1xf32> -> vector<16x1xf32>
    %113 = vector.extract_strided_slice %71 {offsets = [0, 16], sizes = [16, 8], strides = [1, 1]} : vector<16x128xf32> to vector<16x8xf32>
    %cst_70 = arith.constant dense<0.000000e+00> : vector<16x8xf32>
    %114 = tpu.matmul %109, %113, %cst_70 {dimension_numbers = #tpu.dot_dimension_numbers<[1], [0], [0], [1], [0, 0, 1, 1], [], []>} : vector<16x16xf32>, vector<16x8xf32>, vector<16x8xf32> -> vector<16x8xf32>
    %115 = vector.broadcast %112 : vector<16x1xf32> to vector<16x8xf32>
    %116 = arith.mulf %114, %115 : vector<16x8xf32>
    %117 = vector.extract_strided_slice %59 {offsets = [0, 24], sizes = [16, 8], strides = [1, 1]} : vector<16x128xf32> to vector<16x8xf32>
    %118 = vector.extract_strided_slice %65 {offsets = [0, 24], sizes = [16, 8], strides = [1, 1]} : vector<16x128xf32> to vector<16x8xf32>
    %cst_71 = arith.constant dense<0.000000e+00> : vector<16x16xf32>
    %119 = tpu.matmul %117, %118, %cst_71 {dimension_numbers = #tpu.dot_dimension_numbers<[1], [1], [0], [0], [0, 0, 1, 0], [], []>} : vector<16x8xf32>, vector<16x8xf32>, vector<16x16xf32> -> vector<16x16xf32>
    %cst_72 = arith.constant dense<0xFF800000> : vector<16xf32>
    %120 = vector.multi_reduction <maximumf>, %119, %cst_72 [1] : vector<16x16xf32> to vector<16xf32>
    %121 = vector.shape_cast %120 : vector<16xf32> to vector<16x1xf32>
    %122 = vector.broadcast %121 : vector<16x1xf32> to vector<16x16xf32>
    %123 = arith.subf %119, %122 : vector<16x16xf32>
    %124 = math.exp %123 : vector<16x16xf32>
    %cst_73 = arith.constant dense<0.000000e+00> : vector<16xf32>
    %125 = vector.multi_reduction <add>, %124, %cst_73 [1] : vector<16x16xf32> to vector<16xf32>
    %126 = vector.shape_cast %125 : vector<16xf32> to vector<16x1xf32>
    %127 = tpu.reciprocal %126 {approx = true} : vector<16x1xf32> -> vector<16x1xf32>
    %128 = vector.extract_strided_slice %71 {offsets = [0, 24], sizes = [16, 8], strides = [1, 1]} : vector<16x128xf32> to vector<16x8xf32>
    %cst_74 = arith.constant dense<0.000000e+00> : vector<16x8xf32>
    %129 = tpu.matmul %124, %128, %cst_74 {dimension_numbers = #tpu.dot_dimension_numbers<[1], [0], [0], [1], [0, 0, 1, 1], [], []>} : vector<16x16xf32>, vector<16x8xf32>, vector<16x8xf32> -> vector<16x8xf32>
    %130 = vector.broadcast %127 : vector<16x1xf32> to vector<16x8xf32>
    %131 = arith.mulf %129, %130 : vector<16x8xf32>
    %132 = vector.extract_strided_slice %59 {offsets = [0, 32], sizes = [16, 8], strides = [1, 1]} : vector<16x128xf32> to vector<16x8xf32>
    %133 = vector.extract_strided_slice %65 {offsets = [0, 32], sizes = [16, 8], strides = [1, 1]} : vector<16x128xf32> to vector<16x8xf32>
    %cst_75 = arith.constant dense<0.000000e+00> : vector<16x16xf32>
    %134 = tpu.matmul %132, %133, %cst_75 {dimension_numbers = #tpu.dot_dimension_numbers<[1], [1], [0], [0], [0, 0, 1, 0], [], []>} : vector<16x8xf32>, vector<16x8xf32>, vector<16x16xf32> -> vector<16x16xf32>
    %cst_76 = arith.constant dense<0xFF800000> : vector<16xf32>
    %135 = vector.multi_reduction <maximumf>, %134, %cst_76 [1] : vector<16x16xf32> to vector<16xf32>
    %136 = vector.shape_cast %135 : vector<16xf32> to vector<16x1xf32>
    %137 = vector.broadcast %136 : vector<16x1xf32> to vector<16x16xf32>
    %138 = arith.subf %134, %137 : vector<16x16xf32>
    %139 = math.exp %138 : vector<16x16xf32>
    %cst_77 = arith.constant dense<0.000000e+00> : vector<16xf32>
    %140 = vector.multi_reduction <add>, %139, %cst_77 [1] : vector<16x16xf32> to vector<16xf32>
    %141 = vector.shape_cast %140 : vector<16xf32> to vector<16x1xf32>
    %142 = tpu.reciprocal %141 {approx = true} : vector<16x1xf32> -> vector<16x1xf32>
    %143 = vector.extract_strided_slice %71 {offsets = [0, 32], sizes = [16, 8], strides = [1, 1]} : vector<16x128xf32> to vector<16x8xf32>
    %cst_78 = arith.constant dense<0.000000e+00> : vector<16x8xf32>
    %144 = tpu.matmul %139, %143, %cst_78 {dimension_numbers = #tpu.dot_dimension_numbers<[1], [0], [0], [1], [0, 0, 1, 1], [], []>} : vector<16x16xf32>, vector<16x8xf32>, vector<16x8xf32> -> vector<16x8xf32>
    %145 = vector.broadcast %142 : vector<16x1xf32> to vector<16x8xf32>
    %146 = arith.mulf %144, %145 : vector<16x8xf32>
    %147 = vector.extract_strided_slice %59 {offsets = [0, 40], sizes = [16, 8], strides = [1, 1]} : vector<16x128xf32> to vector<16x8xf32>
    %148 = vector.extract_strided_slice %65 {offsets = [0, 40], sizes = [16, 8], strides = [1, 1]} : vector<16x128xf32> to vector<16x8xf32>
    %cst_79 = arith.constant dense<0.000000e+00> : vector<16x16xf32>
    %149 = tpu.matmul %147, %148, %cst_79 {dimension_numbers = #tpu.dot_dimension_numbers<[1], [1], [0], [0], [0, 0, 1, 0], [], []>} : vector<16x8xf32>, vector<16x8xf32>, vector<16x16xf32> -> vector<16x16xf32>
    %cst_80 = arith.constant dense<0xFF800000> : vector<16xf32>
    %150 = vector.multi_reduction <maximumf>, %149, %cst_80 [1] : vector<16x16xf32> to vector<16xf32>
    %151 = vector.shape_cast %150 : vector<16xf32> to vector<16x1xf32>
    %152 = vector.broadcast %151 : vector<16x1xf32> to vector<16x16xf32>
    %153 = arith.subf %149, %152 : vector<16x16xf32>
    %154 = math.exp %153 : vector<16x16xf32>
    %cst_81 = arith.constant dense<0.000000e+00> : vector<16xf32>
    %155 = vector.multi_reduction <add>, %154, %cst_81 [1] : vector<16x16xf32> to vector<16xf32>
    %156 = vector.shape_cast %155 : vector<16xf32> to vector<16x1xf32>
    %157 = tpu.reciprocal %156 {approx = true} : vector<16x1xf32> -> vector<16x1xf32>
    %158 = vector.extract_strided_slice %71 {offsets = [0, 40], sizes = [16, 8], strides = [1, 1]} : vector<16x128xf32> to vector<16x8xf32>
    %cst_82 = arith.constant dense<0.000000e+00> : vector<16x8xf32>
    %159 = tpu.matmul %154, %158, %cst_82 {dimension_numbers = #tpu.dot_dimension_numbers<[1], [0], [0], [1], [0, 0, 1, 1], [], []>} : vector<16x16xf32>, vector<16x8xf32>, vector<16x8xf32> -> vector<16x8xf32>
    %160 = vector.broadcast %157 : vector<16x1xf32> to vector<16x8xf32>
    %161 = arith.mulf %159, %160 : vector<16x8xf32>
    %162 = vector.extract_strided_slice %59 {offsets = [0, 48], sizes = [16, 8], strides = [1, 1]} : vector<16x128xf32> to vector<16x8xf32>
    %163 = vector.extract_strided_slice %65 {offsets = [0, 48], sizes = [16, 8], strides = [1, 1]} : vector<16x128xf32> to vector<16x8xf32>
    %cst_83 = arith.constant dense<0.000000e+00> : vector<16x16xf32>
    %164 = tpu.matmul %162, %163, %cst_83 {dimension_numbers = #tpu.dot_dimension_numbers<[1], [1], [0], [0], [0, 0, 1, 0], [], []>} : vector<16x8xf32>, vector<16x8xf32>, vector<16x16xf32> -> vector<16x16xf32>
    %cst_84 = arith.constant dense<0xFF800000> : vector<16xf32>
    %165 = vector.multi_reduction <maximumf>, %164, %cst_84 [1] : vector<16x16xf32> to vector<16xf32>
    %166 = vector.shape_cast %165 : vector<16xf32> to vector<16x1xf32>
    %167 = vector.broadcast %166 : vector<16x1xf32> to vector<16x16xf32>
    %168 = arith.subf %164, %167 : vector<16x16xf32>
    %169 = math.exp %168 : vector<16x16xf32>
    %cst_85 = arith.constant dense<0.000000e+00> : vector<16xf32>
    %170 = vector.multi_reduction <add>, %169, %cst_85 [1] : vector<16x16xf32> to vector<16xf32>
    %171 = vector.shape_cast %170 : vector<16xf32> to vector<16x1xf32>
    %172 = tpu.reciprocal %171 {approx = true} : vector<16x1xf32> -> vector<16x1xf32>
    %173 = vector.extract_strided_slice %71 {offsets = [0, 48], sizes = [16, 8], strides = [1, 1]} : vector<16x128xf32> to vector<16x8xf32>
    %cst_86 = arith.constant dense<0.000000e+00> : vector<16x8xf32>
    %174 = tpu.matmul %169, %173, %cst_86 {dimension_numbers = #tpu.dot_dimension_numbers<[1], [0], [0], [1], [0, 0, 1, 1], [], []>} : vector<16x16xf32>, vector<16x8xf32>, vector<16x8xf32> -> vector<16x8xf32>
    %175 = vector.broadcast %172 : vector<16x1xf32> to vector<16x8xf32>
    %176 = arith.mulf %174, %175 : vector<16x8xf32>
    %177 = vector.extract_strided_slice %59 {offsets = [0, 56], sizes = [16, 8], strides = [1, 1]} : vector<16x128xf32> to vector<16x8xf32>
    %178 = vector.extract_strided_slice %65 {offsets = [0, 56], sizes = [16, 8], strides = [1, 1]} : vector<16x128xf32> to vector<16x8xf32>
    %cst_87 = arith.constant dense<0.000000e+00> : vector<16x16xf32>
    %179 = tpu.matmul %177, %178, %cst_87 {dimension_numbers = #tpu.dot_dimension_numbers<[1], [1], [0], [0], [0, 0, 1, 0], [], []>} : vector<16x8xf32>, vector<16x8xf32>, vector<16x16xf32> -> vector<16x16xf32>
    %cst_88 = arith.constant dense<0xFF800000> : vector<16xf32>
    %180 = vector.multi_reduction <maximumf>, %179, %cst_88 [1] : vector<16x16xf32> to vector<16xf32>
    %181 = vector.shape_cast %180 : vector<16xf32> to vector<16x1xf32>
    %182 = vector.broadcast %181 : vector<16x1xf32> to vector<16x16xf32>
    %183 = arith.subf %179, %182 : vector<16x16xf32>
    %184 = math.exp %183 : vector<16x16xf32>
    %cst_89 = arith.constant dense<0.000000e+00> : vector<16xf32>
    %185 = vector.multi_reduction <add>, %184, %cst_89 [1] : vector<16x16xf32> to vector<16xf32>
    %186 = vector.shape_cast %185 : vector<16xf32> to vector<16x1xf32>
    %187 = tpu.reciprocal %186 {approx = true} : vector<16x1xf32> -> vector<16x1xf32>
    %188 = vector.extract_strided_slice %71 {offsets = [0, 56], sizes = [16, 8], strides = [1, 1]} : vector<16x128xf32> to vector<16x8xf32>
    %cst_90 = arith.constant dense<0.000000e+00> : vector<16x8xf32>
    %189 = tpu.matmul %184, %188, %cst_90 {dimension_numbers = #tpu.dot_dimension_numbers<[1], [0], [0], [1], [0, 0, 1, 1], [], []>} : vector<16x16xf32>, vector<16x8xf32>, vector<16x8xf32> -> vector<16x8xf32>
    %190 = vector.broadcast %187 : vector<16x1xf32> to vector<16x8xf32>
    %191 = arith.mulf %189, %190 : vector<16x8xf32>
    %192 = tpu.concatenate %86, %101, %116, %131, %146, %161, %176, %191 in 1 : vector<16x8xf32>, vector<16x8xf32>, vector<16x8xf32>, vector<16x8xf32>, vector<16x8xf32>, vector<16x8xf32>, vector<16x8xf32>, vector<16x8xf32> -> vector<16x64xf32>
    %c0_91 = arith.constant 0 : index
    %c0_92 = arith.constant 0 : index
    %193 = vector.load %arg6[%c0_91, %c0_92] : memref<64x128xf32, #tpu.memory_space<vmem>>, vector<64x128xf32>
    %cst_93 = arith.constant dense<0.000000e+00> : vector<16x128xf32>
    %194 = tpu.matmul %192, %193, %cst_93 {dimension_numbers = #tpu.dot_dimension_numbers<[1], [0], [0], [1], [0, 0, 1, 1], [], []>} : vector<16x64xf32>, vector<64x128xf32>, vector<16x128xf32> -> vector<16x128xf32>
    %c5 = arith.constant 5 : index
    %c0_94 = arith.constant 0 : index
    %195 = vector.load %arg7[%c5, %c0_94] : memref<6x128xf32, #tpu.memory_space<vmem>>, vector<1x128xf32>
    %196 = vector.broadcast %195 : vector<1x128xf32> to vector<16x128xf32>
    %197 = arith.addf %194, %196 : vector<16x128xf32>
    %c0_95 = arith.constant 0 : index
    %c0_96 = arith.constant 0 : index
    %c0_97 = arith.constant 0 : index
    %198 = vector.load %arg9[%c0_95, %c0_96, %c0_97] : memref<1x16x128xf32, #tpu.memory_space<vmem>>, vector<1x16x128xf32>
    %199 = vector.shape_cast %198 : vector<1x16x128xf32> to vector<16x128xf32>
    %200 = vector.shape_cast %197 : vector<16x128xf32> to vector<1x16x128xf32>
    tpu.vector_store %arg9[%c0_95, %c0_96, %c0_97], %200 {strides = array<i32>} : memref<1x16x128xf32, #tpu.memory_space<vmem>>, vector<1x16x128xf32>,
    return
  }
  func.func @transform_0(%arg0: i32) -> (i32, i32, i32) {
    %c0_i32 = arith.constant 0 : i32
    %c0_i32_0 = arith.constant 0 : i32
    %c0_i32_1 = arith.constant 0 : i32
    return %arg0, %c0_i32, %c0_i32_0 : i32, i32, i32
  }
  func.func @transform_1(%arg0: i32) -> (i32, i32, i32) {
    %c0_i32 = arith.constant 0 : i32
    %c0_i32_0 = arith.constant 0 : i32
    %c0_i32_1 = arith.constant 0 : i32
    return %arg0, %c0_i32, %c0_i32_0 : i32, i32, i32
  }
  func.func @transform_2(%arg0: i32) -> (i32, i32) {
    %c0_i32 = arith.constant 0 : i32
    %c0_i32_0 = arith.constant 0 : i32
    %c0_i32_1 = arith.constant 0 : i32
    return %c0_i32, %c0_i32_0 : i32, i32
  }
  func.func @transform_3(%arg0: i32) -> (i32, i32, i32) {
    %c0_i32 = arith.constant 0 : i32
    %c0_i32_0 = arith.constant 0 : i32
    %c0_i32_1 = arith.constant 0 : i32
    %c0_i32_2 = arith.constant 0 : i32
    return %c0_i32, %c0_i32_0, %c0_i32_1 : i32, i32, i32
  }
  func.func @transform_4(%arg0: i32) -> (i32, i32, i32) {
    %c0_i32 = arith.constant 0 : i32
    %c0_i32_0 = arith.constant 0 : i32
    %c0_i32_1 = arith.constant 0 : i32
    %c0_i32_2 = arith.constant 0 : i32
    return %c0_i32, %c0_i32_0, %c0_i32_1 : i32, i32, i32
  }
  func.func @transform_5(%arg0: i32) -> (i32, i32) {
    %c0_i32 = arith.constant 0 : i32
    %c0_i32_0 = arith.constant 0 : i32
    %c0_i32_1 = arith.constant 0 : i32
    return %c0_i32, %c0_i32_0 : i32, i32
  }
  func.func @transform_6(%arg0: i32) -> (i32, i32) {
    %c0_i32 = arith.constant 0 : i32
    %c0_i32_0 = arith.constant 0 : i32
    %c0_i32_1 = arith.constant 0 : i32
    return %c0_i32, %c0_i32_0 : i32, i32
  }
  func.func @transform_7(%arg0: i32) -> (i32, i32, i32) {
    %c0_i32 = arith.constant 0 : i32
    %c0_i32_0 = arith.constant 0 : i32
    %c0_i32_1 = arith.constant 0 : i32
    return %arg0, %c0_i32, %c0_i32_0 : i32, i32, i32
  }
  func.func @transform_8(%arg0: i32) -> (i32, i32, i32) {
    %c0_i32 = arith.constant 0 : i32
    %c0_i32_0 = arith.constant 0 : i32
    %c0_i32_1 = arith.constant 0 : i32
    return %arg0, %c0_i32, %c0_i32_0 : i32, i32, i32
  }
}

</mosaic_0001>

<bundles_post_ra>
// kernel: tpu_custom_call.1
= control target key start
LH: loop header
LB: loop body
LE: loop exit
PB: predicated region body
PF: predicated region fallthrough
CT: control target
= control target key end

     0   :  { %14 = vsyncpa [#allocation3], 0  ;;  %s6012_s0 = inlined_call_operand.vmem [shape: f32[2,16,128], index: 0, kind: input, shape index: {}]   ;;  %s6013_s1 = inlined_call_operand.vmem [shape: f32[2,48,16], index: 1, kind: input, shape index: {}]   ;;  %s6014_s2 = inlined_call_operand.vmem [shape: f32[16,128], index: 2, kind: input, shape index: {}]   ;;  %s6015_s3 = inlined_call_operand.hbm [shape: f32[2,512,128], index: 3, kind: input, shape index: {}]   ;;  %s6016_s4 = inlined_call_operand.hbm [shape: f32[3,128,128], index: 4, kind: input, shape index: {}]   ;;  %s6017_s5 = inlined_call_operand.vmem [shape: f32[64,128], index: 5, kind: input, shape index: {}]   ;;  %s6018_s6 = inlined_call_operand.vmem [shape: f32[6,128], index: 6, kind: input, shape index: {}]   ;;  %s6019_s7 = inlined_call_operand.hbm [shape: f32[2,16,128], index: 7, kind: output, shape index: {0}]   ;;  %s6020_s8 = inlined_call_operand.hbm [shape: f32[2,16,128], index: 8, kind: output, shape index: {1}]  }
   0x1   :  { %15 = vsyncpa [#allocation6], 0 }
   0x2   :  { %16 = vsyncpa [#allocation4], 0 }
   0x3   :  { %18 = vsyncpa [#allocation4 + $0x1], 0 }
   0x4   :  { %19 = vsyncpa [#allocation9], 0 }
   0x5   :  { %21 = vsyncpa [#allocation9 + $0x1], 0  ;;  %s5390_s27 = smov 0   ;;  %s5392_s28 = smov 0  }
   0x6   :  { %s5394_s29 = smov 0   ;;  %s5396_s30 = smov 0  }
   0x7 LB: > { %6025 = sst [smem:[#allocation14_spill]] %s5318_s29  ;;  %s5411_s9 = sadd.s32 4294967295, %s5322_s30   ;;  %s5322_s30 = sphi %s5396_s30, %s6044_s30   ;;  %s5318_s29 = sphi %s5394_s29, %s6041_s29   ;;  %s5314_s28 = sphi %s5392_s28, %s6043_s28   ;;  %s5310_s27 = sphi %s5390_s27, %s6042_s27  }
   0x8   : > { %s3557_s10 = sadd.s32 4294967294, %s5322_s30   ;;  %s5415_s11 = sadd.s32 1, %s5322_s30  }
   0x9   : > { %s191_s12 = sadd.s32 1, %s5318_s29  ;;  %s188_s13 = ssub.s32 %s5322_s30, %s5415_s11 }
   0xa   : > { %p201_p0 = scmp.ne.s32.totalorder %s5318_s29, %s5314_s28  ;;  %p189_p1 = scmp.eq.s32.totalorder %s188_s13, 0 }
   0xb   : > { %p202_p2 = scmp.eq.s32.totalorder %s5411_s9, 1  ;;  %p207_p3 = scmp.ne.s32.totalorder %s5314_s28, %s5310_s27 }
   0xc   : > { %p208_p4 = scmp.eq.s32.totalorder %s3557_s10, 1  ;;  %p3558_p7 = scmp.ge.s32.totalorder %s5322_s30, 1 }
   0xd   : > { %s5426_s14 = scalar_select %p189_p1, %s5318_s29, %s191_s12  }
   0xe   : > { %p5428_p5 = por %p202_p2, %p201_p0  ;;  %p5432_p6 = por %p208_p4, %p207_p3 }
   0xf   : > { %6026 = sst [smem:[#allocation15_spill]] %s5426_s14  ;;  %p241_p8 = scmp.lt.s32.totalorder %s5322_s30, 3 }
  0x10   : > { %s6027_s15 = scalar_select %p5428_p5, 1, 0 }
  0x11   : > { %s6028_s16 = scalar_select %p5432_p6, 1, 0 }
  0x12   : > { %p6021_p9 = scmp.eq.s32.totalorder %s5411_s9, 0  ;;  %p5439_p10 = pnand %p3558_p7, %p241_p8 }
  0x13   : > { %s5324_s18 = smov [#allocation2]   ;;  %s5325_s21 = smov [#allocation5]  }
  0x14   : > { %s6029_s17 = scalar_select %p5439_p10, 1, 0 }
  0x15   : > { %s256_s19 = sshll.u32 %s5324_s18, 4  ;;  %p4960_p11 = pneg %p5439_p10  ;;  %s257_s19 = int_to_ptr.vmem [resolvable:$true] %s256_s19 }
  0x16   : > { %s269_s22 = sshll.u32 %s5325_s21, 4  ;;  %s5164_s25 = scalar_lea.hbm %s6015_s3, 16384  ;;  %s5451_s22 = int_to_ptr.vmem [resolvable:$true] %s269_s22 }
  0x17   : > { %p5447_p12 = pnand %p6021_p9, %p4960_p11  ;;  %p5165_p13 = scmp.ne.s32.totalorder %s6015_s3, %s5164_s25 }
  0x18   : > { %p5171_p3 = scmp.lt.u32.totalorder %s5164_s25, %s6015_s3 }
  0x19   : > { %p5166_p0 = pneg %p5447_p12 }
  0x1b   : > { %p5167_p1 = pnand %p5166_p0, %p5165_p13 }
  0x1d   : > { %p5168_p2 = pneg %p5167_p1 }
  0x1f   : > { %p5173_p4 = pnand %p5171_p3, %p5168_p2 }
  0x21   : > { %5176 = shalt.err (!%p5173_p4)
}
  0x22   : > { %s5177_s18 = scalar_lea.vmem %s257_s19, 16384  ;;  %p5185_p9 = scmp.lt.s32.totalorder %s257_s19, %s257_s19 }
  0x23   : > { %p5178_p7 = scmp.ne.s32.totalorder %s257_s19, %s5177_s18  ;;  %p5186_p6 = scmp.lt.s32.totalorder %s5177_s18, %s5177_s18 }
  0x25   : > { %p5180_p8 = pnand %p5178_p7, %p5166_p0  ;;  %p5187_p5 = por %p5186_p6, %p5185_p9 }
  0x27   : > { %p5181_p11 = pneg %p5180_p8 }
  0x29   : > { %p5188_p10 = pnand %p5187_p5, %p5181_p11 }
  0x2b   : > { %5191 = shalt.err (!%p5188_p10)
}
  0x2c   : > { %s5326_s21 = smov 128   ;;  %s5327_s23 = smov 8  }
  0x2d   : > { %4963 = dma.hbm_to_vmem [thread:$0]  (!%p5447_p12), %s6015_s3, 16384, %s257_s19, [#allocation3], %s5326_s21, %s5326_s21, %s5327_s23  }
  0x2e   : > { %s5192_s12 = scalar_lea.hbm %s6016_s4, 6144 }
  0x2f   : > { %p5193_p13 = scmp.ne.s32.totalorder %s6016_s4, %s5192_s12  ;;  %p5199_p9 = scmp.lt.u32.totalorder %s5192_s12, %s6016_s4 }
  0x31   : > { %p5195_p5 = pnand %p5193_p13, %p5166_p0 }
  0x33   : > { %p5196_p6 = pneg %p5195_p5 }
  0x35   : > { %p5201_p10 = pnand %p5199_p9, %p5196_p6 }
  0x37   : > { %5204 = shalt.err (!%p5201_p10)
}
  0x38   : > { %s5205_s19 = scalar_lea.vmem %s5451_s22, 6144  ;;  %p5213_p4 = scmp.lt.s32.totalorder %s5451_s22, %s5451_s22 }
  0x39   : > { %p5206_p1 = scmp.ne.s32.totalorder %s5451_s22, %s5205_s19  ;;  %p5214_p7 = scmp.lt.s32.totalorder %s5205_s19, %s5205_s19 }
  0x3b   : > { %p5208_p2 = pnand %p5206_p1, %p5166_p0  ;;  %p5215_p8 = por %p5214_p7, %p5213_p4 }
  0x3d   : > { %p5209_p3 = pneg %p5208_p2 }
  0x3f   : > { %p5216_p11 = pnand %p5215_p8, %p5209_p3 }
  0x41   : > { %5219 = shalt.err (!%p5216_p11)
}
  0x42   : > { %4966 = dma.hbm_to_vmem [thread:$0]  (!%p5447_p12), %s6016_s4, 6144, %s5451_s22, [#allocation6], %s5326_s21, %s5326_s21, %s5327_s23  }
  0x43   : > { %p6031_p13 = scmp.ne.s32.totalorder %s6029_s17, 0 }
  0x44   : > { %p6032_p5 = scmp.eq.s32.totalorder (!%p6031_p13), %s5411_s9, 0 }
  0x45   : > { %307 = sbr.rel (%p6031_p13) target bundleno = 4609 (0x1201), region = 48 }
  0x4c   : > { %5293 = dma.done.wait (%p6032_p5), [#allocation3], 16384   ;;  %p6033_p0 = pmov %p6032_p5 }
  0x4e   : > { %5295 = vsyncadd (%p6033_p0), [#allocation3], 4294950912  ;;  %p6034_p6 = pmov %p6033_p0 }
  0x4f   : > { %p6035_p9 = pmov %p6033_p0 }
  0x50   : > { %5297 = dma.done.wait (%p6034_p6), [#allocation6], 6144  }
  0x51   : > { %5299 = vsyncadd (%p6035_p9), [#allocation6], 4294961152  ;;  %p355_p10 = scmp.lt.s32.totalorder %s5411_s9, 1  ;;  %vm373_vm0 = vcmask 130048   ;;  %v503_v4 = vld [vmem:[#allocation2 + $0x80] sm:$0xff]  ;;  %v504_v5 = vld [vmem:[#allocation2 + $0x88] sm:$0xff] }
  0x52   : > { %v505_v6 = vld [vmem:[#allocation2 + $0x90] sm:$0xff]  ;;  %v506_v7 = vld [vmem:[#allocation2 + $0x98] sm:$0xff]  ;;  %v4483_v9 = vpack.c.bf16 %v504_v5, %v503_v4  ;;  %v507_v12 = vld [vmem:[#allocation2 + $0xa0] sm:$0xff]  ;;  %vm1629_vm1 = vcmask 64512   ;;  %s5328_s18 = smov 120   ;;  %s5329_s19 = smov 112  }
  0x53   : > { %s356_s20 = scalar_select %p355_p10, %s5411_s9, 1  ;;  %v4487_v11 = vpack.c.bf16 %v506_v7, %v505_v6  ;;  %v508_v13 = vld [vmem:[#allocation2 + $0xa8] sm:$0xff]  ;;  %v509_v17 = vld [vmem:[#allocation2 + $0xb0] sm:$0xff]  ;;  %v510_v18 = vld [vmem:[#allocation2 + $0xb8] sm:$0xff]  ;;  %vm3282_vm3 = vcmask 195584   ;;  %vm3285_vm4 = vcmask 261120  }
  0x54   : > { %v4491_v16 = vpack.c.bf16 %v508_v13, %v507_v12  ;;  %v4495_v20 = vpack.c.bf16 %v510_v18, %v509_v17  ;;  %v511_v21 = vld [vmem:[#allocation2 + $0xc0] sm:$0xff]  ;;  %v512_v22 = vld [vmem:[#allocation2 + $0xc8] sm:$0xff]  ;;  %v513_v24 = vld [vmem:[#allocation2 + $0xd0] sm:$0xff]  ;;  %s5330_s29 = smov 104   ;;  %s5331_s14 = smov 96   ;;  %vm3288_vm5 = vcmask 326656  }
  0x55   : > { %s3646_s22 = sshll.u32 %s356_s20, 4  ;;  %s4947_s21 = smul.u32 48, %s356_s20  ;;  %v4499_v23 = vpack.c.bf16 %v512_v22, %v511_v21  ;;  %v514_v25 = vld [vmem:[#allocation2 + $0xd8] sm:$0xff]  ;;  %v515_v27 = vld [vmem:[#allocation2 + $0xe0] sm:$0xff]  ;;  %v516_v28 = vld [vmem:[#allocation2 + $0xe8] sm:$0xff]  ;;  %vm3291_vm6 = vcmask 392192  }
  0x56   : > { %s359_s24 = scalar_lea.vmem %s6012_s0, %s3646_s22  ;;  %v4503_v26 = vpack.c.bf16 %v514_v25, %v513_v24  ;;  %v4507_v29 = vpack.c.bf16 %v516_v28, %v515_v27  ;;  %v517_v30 = vld [vmem:[#allocation2 + $0xf0] sm:$0xff]  ;;  %v518_v31 = vld [vmem:[#allocation2 + $0xf8] sm:$0xff]  ;;  %v487_v33 = vld [vmem:[#allocation2] sm:$0xff]  ;;  %s5332_s20 = smov 88   ;;  %vm3294_vm7 = vcmask 457728   ;;  %vm3310_vm8 = vcmask 523264  }
  0x57   : > { %s5518_s10 = scalar_lea.vmem %s6013_s1, %s4947_s21  ;;  %v5520_v0 = vld [vmem:[%s359_s24] sm:$0xff]  ;;  %v5522_v1 = vld [vmem:[%s359_s24 + $0x8] sm:$0xff]  ;;  %v4511_v32 = vpack.c.bf16 %v518_v31, %v517_v30  ;;  %v489_v36 = vld [vmem:[#allocation2 + $0x10] sm:$0xff]  ;;  %s5616_s21 = sand.u32 1, %s5314_s28  }
  0x58   : > { %v367_v2 = vld [vmem:[%s5518_s10] sm:$0xff]  ;;  %v4479_v3 = vpack.c.bf16 %v5522_v1, %v5520_v0  ;;  %v5530_v8 = vld [vmem:[%s5518_s10 + $0x8] sm:$0xff]  ;;  %v5533_v10 = vld [vmem:[%s5518_s10 + $0x10] sm:$0xff]  ;;  %s3565_s17 = sshll.u32 %s5616_s21, 4  ;;  %s5333_s22 = smov 80  }
  0x59   : > { %3941 = vmatprep.mubr.msk.f32.mxu1 %vm373_vm0, %v367_v2  ;;  %4094 = vmatprep.mubr.msk.f32.mxu0 %vm373_vm0, %v367_v2  ;;  %v5540_v14 = vld [vmem:[%s5518_s10 + $0x18] sm:$0xff]  ;;  %v5543_v15 = vld [vmem:[%s5518_s10 + $0x20] sm:$0xff]  ;;  %v5550_v19 = vld [vmem:[%s5518_s10 + $0x28] sm:$0xff]  ;;  %s5624_s25 = scalar_lea.vmem [#allocation7], %s3565_s17  ;;  %s5334_s23 = smov 72  }
  0x5a   : > { %4480 = vmatprep.subr.bf16.mxu1 %v4479_v3  ;;  %v488_v34 = vld [vmem:[#allocation2 + $0x8] sm:$0xff]  ;;  %v490_v37 = vld [vmem:[#allocation2 + $0x18] sm:$0xff]  ;;  %v491_v41 = vld [vmem:[#allocation2 + $0x20] sm:$0xff]  ;;  %s5335_s24 = smov 8   ;;  %s5336_s26 = smov 16  }
  0x5b   : > { %4482 = vmatpush3.bf16.msra.mxu1 %v4479_v3  ;;  %v4515_v35 = vpack.c.bf16 %v488_v34, %v487_v33  ;;  %v4519_v40 = vpack.c.bf16 %v490_v37, %v489_v36  ;;  %v492_v42 = vld [vmem:[#allocation2 + $0x28] sm:$0xff]  ;;  %v493_v46 = vld [vmem:[#allocation2 + $0x30] sm:$0xff]  ;;  %v494_v47 = vld [vmem:[#allocation2 + $0x38] sm:$0xff]  ;;  %s5337_s10 = smov 24   ;;  %s5338_s12 = smov 32  }
  0x5c   : > { %4484 = vmatprep.subr.bf16.mxu1 %v4483_v9  ;;  %v4523_v44 = vpack.c.bf16 %v492_v42, %v491_v41  ;;  %v4527_v49 = vpack.c.bf16 %v494_v47, %v493_v46  ;;  %v495_v51 = vld [vmem:[#allocation2 + $0x40] sm:$0xff]  ;;  %v496_v52 = vld [vmem:[#allocation2 + $0x48] sm:$0xff]  ;;  %v497_v54 = vld [vmem:[#allocation2 + $0x50] sm:$0xff]  ;;  %s5339_s13 = smov 40   ;;  %p6038_p1 = scmp.ne.s32.totalorder %s6027_s15, 0 }
  0x5d   : > { %v4531_v53 = vpack.c.bf16 %v496_v52, %v495_v51  ;;  %v498_v55 = vld [vmem:[#allocation2 + $0x58] sm:$0xff]  ;;  %v499_v57 = vld [vmem:[#allocation2 + $0x60] sm:$0xff]  ;;  %v500_v58 = vld [vmem:[#allocation2 + $0x68] sm:$0xff] }
  0x5e   : > { %3942 = vmatmul.mubr.msk.f32.vlgmr.msra.gmra.mrb[0].mxu1 %vm373_vm0, %v5530_v8  ;;  %v4535_v56 = vpack.c.bf16 %v498_v55, %v497_v54  ;;  %v4539_v59 = vpack.c.bf16 %v500_v58, %v499_v57  ;;  %v501_v60 = vld [vmem:[#allocation2 + $0x70] sm:$0xff]  ;;  %v502_v61 = vld [vmem:[#allocation2 + $0x78] sm:$0xff]  ;;  %v669_v63 = vld [vmem:[#allocation2 + $0x100] sm:$0xff] }
  0x5f   : > { %3944 = vmatprep.mubr.msk.f32.mxu1 %vm373_vm0, %v5533_v10  ;;  %4486 = vmatpush3.bf16.msra.mxu1 %v4483_v9  ;;  %v4543_v62 = vpack.c.bf16 %v502_v61, %v501_v60  ;;  %v671_v3 = vld [vmem:[#allocation2 + $0x110] sm:$0xff]  ;;  %v672_v4 = vld [vmem:[#allocation2 + $0x118] sm:$0xff]  ;;  %v673_v6 = vld [vmem:[#allocation2 + $0x120] sm:$0xff] }
  0x60   : > { %4488 = vmatprep.subr.bf16.mxu1 %v4487_v11  ;;  %v4551_v5 = vpack.c.bf16 %v672_v4, %v671_v3  ;;  %v674_v7 = vld [vmem:[#allocation2 + $0x128] sm:$0xff]  ;;  %v676_v12 = vld [vmem:[#allocation2 + $0x138] sm:$0xff]  ;;  %v683_v25 = vld [vmem:[#allocation2 + $0x170] sm:$0xff] }
  0x61   : > { %v4555_v9 = vpack.c.bf16 %v674_v7, %v673_v6  ;;  %v678_v17 = vld [vmem:[#allocation2 + $0x148] sm:$0xff]  ;;  %v680_v21 = vld [vmem:[#allocation2 + $0x158] sm:$0xff]  ;;  %v762_v28 = vld [vmem:[#allocation2 + $0x180] sm:$0xff] }
  0x62   : > { %3945 = vmatmul.mubr.msk.f32.gmra.mrb[2].mxu1 %vm373_vm0, %v5540_v14  ;;  %v764_v31 = vld [vmem:[#allocation2 + $0x190] sm:$0xff]  ;;  %v766_v34 = vld [vmem:[#allocation2 + $0x1a0] sm:$0xff]  ;;  %v771_v41 = vld [vmem:[#allocation2 + $0x1c8] sm:$0xff] }
  0x63   : > { %3947 = vmatprep.mubr.msk.f32.mxu1 %vm373_vm0, %v5543_v15  ;;  %4490 = vmatpush3.bf16.msra.mxu1 %v4487_v11  ;;  %v675_v11 = vld [vmem:[#allocation2 + $0x130] sm:$0xff]  ;;  %v774_v46 = vld [vmem:[#allocation2 + $0x1e0] sm:$0xff]  ;;  %v775_v47 = vld [vmem:[#allocation2 + $0x1e8] sm:$0xff] }
  0x64   : > { %4492 = vmatprep.subr.bf16.mxu1 %v4491_v16  ;;  %v4559_v13 = vpack.c.bf16 %v676_v12, %v675_v11  ;;  %v768_v37 = vld [vmem:[#allocation2 + $0x1b0] sm:$0xff]  ;;  %v777_v51 = vld [vmem:[#allocation2 + $0x1f8] sm:$0xff]  ;;  %v977_v60 = vld [vmem:[#allocation2 + $0x288] sm:$0xff] }
  0x65   : > { %v980_v3 = vld [vmem:[#allocation2 + $0x2a0] sm:$0xff]  ;;  %v981_v4 = vld [vmem:[#allocation2 + $0x2a8] sm:$0xff]  ;;  %v982_v6 = vld [vmem:[#allocation2 + $0x2b0] sm:$0xff] }
  0x66   : > { %3948 = vmatmul.mubr.msk.f32.gmra.mrb[4].mxu1 %vm373_vm0, %v5550_v19  ;;  %v983_v7 = vld [vmem:[#allocation2 + $0x2b8] sm:$0xff]  ;;  %v984_v11 = vld [vmem:[#allocation2 + $0x2c0] sm:$0xff]  ;;  %v985_v12 = vld [vmem:[#allocation2 + $0x2c8] sm:$0xff] }
  0x67   : > { %4494 = vmatpush3.bf16.msra.mxu1 %v4491_v16  ;;  %v677_v16 = vld [vmem:[#allocation2 + $0x140] sm:$0xff]  ;;  %vm5640_vm2 = vmpackc.low %vm1629_vm1, %vm1629_vm1 }
  0x68   : > { %4496 = vmatprep.subr.bf16.mxu1 %v4495_v20  ;;  %v4563_v18 = vpack.c.bf16 %v678_v17, %v677_v16  ;;  %v989_v17 = vld [vmem:[#allocation2 + $0x2e8] sm:$0xff] }
  0x6b   : > { %4498 = vmatpush3.bf16.msra.mxu1 %v4495_v20  ;;  %v679_v20 = vld [vmem:[#allocation2 + $0x150] sm:$0xff] }
  0x6c   : > { %4500 = vmatprep.subr.bf16.mxu1 %v4499_v23  ;;  %v4567_v22 = vpack.c.bf16 %v680_v21, %v679_v20  ;;  %v991_v20 = vld [vmem:[#allocation2 + $0x2f8] sm:$0xff] }
  0x6f   : > { %4502 = vmatpush3.bf16.msra.mxu1 %v4499_v23  ;;  %v682_v23 = vld [vmem:[#allocation2 + $0x168] sm:$0xff] }
  0x70   : > { %4504 = vmatprep.subr.bf16.mxu1 %v4503_v26 }
  0x73   : > { %4506 = vmatpush3.bf16.msra.mxu1 %v4503_v26  ;;  %v684_v26 = vld [vmem:[#allocation2 + $0x178] sm:$0xff] }
  0x74   : > { %4508 = vmatprep.subr.bf16.mxu1 %v4507_v29  ;;  %v4575_v27 = vpack.c.bf16 %v684_v26, %v683_v25  ;;  %v1341_v25 = vld [vmem:[#allocation5 + $0x10] sm:$0xff] }
  0x77   : > { %4510 = vmatpush3.bf16.msra.mxu1 %v4507_v29  ;;  %v763_v29 = vld [vmem:[#allocation2 + $0x188] sm:$0xff] }
  0x78   : > { %4512 = vmatprep.subr.bf16.mxu1 %v4511_v32  ;;  %v4579_v30 = vpack.c.bf16 %v763_v29, %v762_v28  ;;  %v1343_v29 = vld [vmem:[#allocation5 + $0x20] sm:$0xff] }
  0x7b   : > { %4514 = vmatpush3.bf16.msra.mxu1 %v4511_v32  ;;  %v765_v32 = vld [vmem:[#allocation2 + $0x198] sm:$0xff] }
  0x7c   : > { %4516 = vmatprep.subr.bf16.mxu1 %v4515_v35  ;;  %v4583_v33 = vpack.c.bf16 %v765_v32, %v764_v31  ;;  %v1337_v32 = vld [vmem:[%s6014_s2] sm:$0xff] }
 0x131   : > { %v3943_v38 = vpop.f32.mrb[0].mxu1 }
 0x132   : > { %v458_v39 = vpop.f32.mrb[1].mxu1 }
 0x133   : > { %3982 = vmatprep.mubr.f32.mxu1 %v458_v39 }
 0x134   : > { %3983 = vmatmul.mubr.f32.vlgmr.msra.gmra.mrb[6].mxu1 %v3943_v38  ;;  %v769_v38 = vld [vmem:[#allocation2 + $0x1b8] sm:$0xff] }
 0x135   : > { %4518 = vmatpush3.bf16.msra.mxu1 %v4515_v35  ;;  %4017 = vmatprep.mubr.f32.mxu1 %v5520_v0  ;;  %v5555_v43 = vpop.f32.mrb[2].mxu1  ;;  %v670_v0 = vld [vmem:[#allocation2 + $0x108] sm:$0xff]  ;;  %v4591_v39 = vpack.c.bf16 %v769_v38, %v768_v37 }
 0x136   : > { %4520 = vmatprep.subr.bf16.mxu1 %v4519_v40  ;;  %v468_v45 = vpop.f32.mrb[3].mxu1  ;;  %v4547_v2 = vpack.c.bf16 %v670_v0, %v669_v63  ;;  %v767_v35 = vld [vmem:[#allocation2 + $0x1a8] sm:$0xff]  ;;  %v978_v63 = vld [vmem:[#allocation2 + $0x290] sm:$0xff]  ;;  %v979_v0 = vld [vmem:[#allocation2 + $0x298] sm:$0xff] }
 0x137   : > { %v4587_v36 = vpack.c.bf16 %v767_v35, %v766_v34  ;;  %v1346_v34 = vld [vmem:[#allocation5 + $0x38] sm:$0xff]  ;;  %v1348_v37 = vld [vmem:[#allocation5 + $0x48] sm:$0xff] }
 0x139   : > { %4522 = vmatpush3.bf16.msra.mxu1 %v4519_v40  ;;  %v5557_v48 = vpop.f32.mrb[4].mxu1  ;;  %v770_v40 = vld [vmem:[#allocation2 + $0x1c0] sm:$0xff] }
 0x13a   : > { %4524 = vmatprep.subr.bf16.mxu1 %v4523_v44  ;;  %v5559_v50 = vpop.f32.mrb[5].mxu1  ;;  %v4595_v42 = vpack.c.bf16 %v771_v41, %v770_v40  ;;  %v1350_v40 = vld [vmem:[#allocation5 + $0x58] sm:$0xff] }
 0x13d   : > { %4526 = vmatpush3.bf16.msra.mxu1 %v4523_v44  ;;  %v772_v44 = vld [vmem:[#allocation2 + $0x1d0] sm:$0xff] }
 0x13e   : > { %4528 = vmatprep.subr.bf16.mxu1 %v4527_v49 }
 0x141   : > { %4530 = vmatpush3.bf16.msra.mxu1 %v4527_v49  ;;  %v4603_v49 = vpack.c.bf16 %v775_v47, %v774_v46  ;;  %v1354_v46 = vld [vmem:[#allocation5 + $0x78] sm:$0xff] }
 0x142   : > { %4532 = vmatprep.subr.bf16.mxu1 %v4531_v53 }
 0x145   : > { %4534 = vmatpush3.bf16.msra.mxu1 %v4531_v53  ;;  %v3576_v53 = vld [vmem:[%s6018_s6] ss:$0 sm:$0xff] }
 0x146   : > { %4536 = vmatprep.subr.bf16.mxu1 %v4535_v56 }
 0x149   : > { %4538 = vmatpush3.bf16.msra.mxu1 %v4535_v56 }
 0x14a   : > { %4540 = vmatprep.subr.bf16.mxu1 %v4539_v59 }
 0x14d   : > { %4542 = vmatpush3.bf16.msra.mxu1 %v4539_v59  ;;  %v976_v59 = vld [vmem:[#allocation2 + $0x280] sm:$0xff] }
 0x14e   : > { %4544 = vmatprep.subr.bf16.mxu1 %v4543_v62 }
 0x151   : > { %4546 = vmatpush3.bf16.msra.mxu1 %v4543_v62  ;;  %v4615_v62 = vpack.c.bf16 %v977_v60, %v976_v59  ;;  %v1535_v60 = vld [vmem:[#allocation5 + $0x110] sm:$0xff] }
 0x152   : > { %4548 = vmatprep.subr.bf16.mxu1 %v4547_v2 }
 0x154   : > { %4018 = vmatmul.mubr.f32.vlgmr.msra.gmra.mrb[6].mxu1 %v5522_v1  ;;  %v681_v1 = vld [vmem:[#allocation2 + $0x160] sm:$0xff] }
 0x155   : > { %4550 = vmatpush3.bf16.msra.mxu1 %v4547_v2  ;;  %4052 = vmatprep.mubr.f32.mxu1 %v468_v45  ;;  %v4571_v24 = vpack.c.bf16 %v682_v23, %v681_v1  ;;  %v773_v45 = vld [vmem:[#allocation2 + $0x1d8] sm:$0xff]  ;;  %v4619_v2 = vpack.c.bf16 %v979_v0, %v978_v63  ;;  %v1339_v23 = vld [vmem:[#allocation5] sm:$0xff]  ;;  %v965_v63 = vld [vmem:[#allocation2 + $0x228] sm:$0xff] }
 0x156   : > { %4552 = vmatprep.subr.bf16.mxu1 %v4551_v5  ;;  %v1338_v0 = vld [vmem:[%s6014_s2 + $0x8] sm:$0xff] }
 0x159   : > { %4554 = vmatpush3.bf16.msra.mxu1 %v4551_v5  ;;  %v4623_v5 = vpack.c.bf16 %v981_v4, %v980_v3 }
 0x15a   : > { %4556 = vmatprep.subr.bf16.mxu1 %v4555_v9 }
 0x15d   : > { %4558 = vmatpush3.bf16.msra.mxu1 %v4555_v9  ;;  %v4627_v9 = vpack.c.bf16 %v983_v7, %v982_v6  ;;  %v1537_v6 = vld [vmem:[#allocation5 + $0x120] sm:$0xff]  ;;  %v1538_v7 = vld [vmem:[#allocation5 + $0x128] sm:$0xff] }
 0x15e   : > { %4560 = vmatprep.subr.bf16.mxu1 %v4559_v13 }
 0x161   : > { %4562 = vmatpush3.bf16.msra.mxu1 %v4559_v13  ;;  %v987_v13 = vld [vmem:[#allocation2 + $0x2d8] sm:$0xff] }
 0x162   : > { %4564 = vmatprep.subr.bf16.mxu1 %v4563_v18 }
 0x165   : > { %4566 = vmatpush3.bf16.msra.mxu1 %v4563_v18  ;;  %v990_v18 = vld [vmem:[#allocation2 + $0x2f0] sm:$0xff] }
 0x166   : > { %4568 = vmatprep.subr.bf16.mxu1 %v4567_v22  ;;  %v4643_v21 = vpack.c.bf16 %v991_v20, %v990_v18  ;;  %v1541_v18 = vld [vmem:[#allocation5 + $0x140] sm:$0xff]  ;;  %v1542_v20 = vld [vmem:[#allocation5 + $0x148] sm:$0xff] }
 0x169   : > { %4570 = vmatpush3.bf16.msra.mxu1 %v4567_v22  ;;  %v961_v22 = vld [vmem:[#allocation2 + $0x208] sm:$0xff] }
 0x16a   : > { %4572 = vmatprep.subr.bf16.mxu1 %v4571_v24 }
 0x16d   : > { %4574 = vmatpush3.bf16.msra.mxu1 %v4571_v24  ;;  %v1340_v24 = vld [vmem:[#allocation5 + $0x8] sm:$0xff] }
 0x16e   : > { %4576 = vmatprep.subr.bf16.mxu1 %v4575_v27  ;;  %v4743_v26 = vpack.c.bf16 %v1340_v24, %v1339_v23  ;;  %v1543_v23 = vld [vmem:[#allocation5 + $0x150] sm:$0xff]  ;;  %v1544_v24 = vld [vmem:[#allocation5 + $0x158] sm:$0xff] }
 0x171   : > { %4578 = vmatpush3.bf16.msra.mxu1 %v4575_v27  ;;  %v1342_v27 = vld [vmem:[#allocation5 + $0x18] sm:$0xff] }
 0x172   : > { %4580 = vmatprep.subr.bf16.mxu1 %v4579_v30  ;;  %v4747_v28 = vpack.c.bf16 %v1342_v27, %v1341_v25  ;;  %v972_v25 = vld [vmem:[#allocation2 + $0x260] sm:$0xff]  ;;  %v4827_v27 = vpack.c.bf16 %v1544_v24, %v1543_v23  ;;  %v1438_v23 = vld [vmem:[#allocation5 + $0x90] sm:$0xff]  ;;  %v1439_v24 = vld [vmem:[#allocation5 + $0x98] sm:$0xff] }
 0x174   : > { %4053 = vmatmul.mubr.f32.vlgmr.msra.gmra.mrb[6].mxu1 %v5555_v43  ;;  %v4599_v43 = vpack.c.bf16 %v773_v45, %v772_v44  ;;  %v1352_v44 = vld [vmem:[#allocation5 + $0x68] sm:$0xff] }
 0x175   : > { %4582 = vmatpush3.bf16.msra.mxu1 %v4579_v30  ;;  %4087 = vmatprep.mubr.f32.mxu1 %v5559_v50  ;;  %v776_v50 = vld [vmem:[#allocation2 + $0x1f0] sm:$0xff]  ;;  %v1344_v30 = vld [vmem:[#allocation5 + $0x28] sm:$0xff] }
 0x176   : > { %4584 = vmatprep.subr.bf16.mxu1 %v4583_v33  ;;  %v4607_v52 = vpack.c.bf16 %v777_v51, %v776_v50  ;;  %v4751_v31 = vpack.c.bf16 %v1344_v30, %v1343_v29  ;;  %v963_v50 = vld [vmem:[#allocation2 + $0x218] sm:$0xff]  ;;  %v1533_v51 = vld [vmem:[#allocation5 + $0x100] sm:$0xff]  ;;  %v1546_v30 = vld [vmem:[#allocation5 + $0x168] sm:$0xff] }
 0x177   : > { %v1545_v29 = vld [vmem:[#allocation5 + $0x160] sm:$0xff] }
 0x179   : > { %4586 = vmatpush3.bf16.msra.mxu1 %v4583_v33  ;;  %v1345_v33 = vld [vmem:[#allocation5 + $0x30] sm:$0xff] }
 0x17a   : > { %4588 = vmatprep.subr.bf16.mxu1 %v4587_v36  ;;  %v4755_v35 = vpack.c.bf16 %v1346_v34, %v1345_v33  ;;  %v4831_v33 = vpack.c.bf16 %v1546_v30, %v1545_v29  ;;  %v1442_v29 = vld [vmem:[#allocation5 + $0xb0] sm:$0xff]  ;;  %v1443_v30 = vld [vmem:[#allocation5 + $0xb8] sm:$0xff] }
 0x17d   : > { %4590 = vmatpush3.bf16.msra.mxu1 %v4587_v36  ;;  %v1347_v36 = vld [vmem:[#allocation5 + $0x40] sm:$0xff] }
 0x17e   : > { %4592 = vmatprep.subr.bf16.mxu1 %v4591_v39  ;;  %v4759_v38 = vpack.c.bf16 %v1348_v37, %v1347_v36  ;;  %v1143_v36 = vld [vmem:[#allocation2 + $0x308] sm:$0xff] }
 0x181   : > { %4594 = vmatpush3.bf16.msra.mxu1 %v4591_v39  ;;  %v1349_v39 = vld [vmem:[#allocation5 + $0x50] sm:$0xff] }
 0x182   : > { %4596 = vmatprep.subr.bf16.mxu1 %v4595_v42  ;;  %v4763_v41 = vpack.c.bf16 %v1350_v40, %v1349_v39  ;;  %v1145_v39 = vld [vmem:[#allocation2 + $0x318] sm:$0xff] }
 0x185   : > { %4598 = vmatpush3.bf16.msra.mxu1 %v4595_v42  ;;  %v1351_v42 = vld [vmem:[#allocation5 + $0x60] sm:$0xff] }
 0x186   : > { %4600 = vmatprep.subr.bf16.mxu1 %v4599_v43  ;;  %v4767_v45 = vpack.c.bf16 %v1352_v44, %v1351_v42  ;;  %v1147_v42 = vld [vmem:[#allocation2 + $0x328] sm:$0xff] }
 0x189   : > { %4602 = vmatpush3.bf16.msra.mxu1 %v4599_v43  ;;  %v1353_v43 = vld [vmem:[#allocation5 + $0x70] sm:$0xff] }
 0x18a   : > { %4604 = vmatprep.subr.bf16.mxu1 %v4603_v49  ;;  %v4771_v47 = vpack.c.bf16 %v1354_v46, %v1353_v43  ;;  %v1149_v43 = vld [vmem:[#allocation2 + $0x338] sm:$0xff] }
 0x18d   : > { %4606 = vmatpush3.bf16.msra.mxu1 %v4603_v49  ;;  %v962_v49 = vld [vmem:[#allocation2 + $0x210] sm:$0xff] }
 0x18e   : > { %4608 = vmatprep.subr.bf16.mxu1 %v4607_v52 }
 0x191   : > { %4610 = vmatpush3.bf16.msra.mxu1 %v4607_v52  ;;  %v1534_v52 = vld [vmem:[#allocation5 + $0x108] sm:$0xff] }
 0x192   : > { %4744 = vmatprep.subr.bf16.mxu1 %v4743_v26  ;;  %v4807_v59 = vpack.c.bf16 %v1534_v52, %v1533_v51  ;;  %v1152_v51 = vld [vmem:[#allocation2 + $0x350] sm:$0xff]  ;;  %v1153_v52 = vld [vmem:[#allocation2 + $0x358] sm:$0xff] }
 0x194   : > { %4088 = vmatmul.mubr.f32.vlgmr.msra.gmra.mrb[6].mxu1 %v5557_v48 }
 0x195   : > { %4746 = vmatpush3.bf16.msra.mxu1 %v4743_v26  ;;  %4275 = vmatprep.mubr.f32.mxu1 %v1337_v32  ;;  %v973_v26 = vld [vmem:[#allocation2 + $0x268] sm:$0xff]  ;;  %v975_v32 = vld [vmem:[#allocation2 + $0x278] sm:$0xff] }
 0x196   : > { %4748 = vmatprep.subr.bf16.mxu1 %v4747_v28 }
 0x199   : > { %4750 = vmatpush3.bf16.msra.mxu1 %v4747_v28  ;;  %v4671_v28 = vpack.c.bf16 %v973_v26, %v972_v25  ;;  %v4779_v25 = vpack.c.bf16 %v1439_v24, %v1438_v23  ;;  %v1440_v26 = vld [vmem:[#allocation5 + $0xa0] sm:$0xff] }
 0x19a   : > { %4752 = vmatprep.subr.bf16.mxu1 %v4751_v31 }
 0x19d   : > { %4754 = vmatpush3.bf16.msra.mxu1 %v4751_v31  ;;  %v974_v31 = vld [vmem:[#allocation2 + $0x270] sm:$0xff] }
 0x19e   : > { %4756 = vmatprep.subr.bf16.mxu1 %v4755_v35  ;;  %v4675_v34 = vpack.c.bf16 %v975_v32, %v974_v31  ;;  %v4787_v31 = vpack.c.bf16 %v1443_v30, %v1442_v29  ;;  %v1444_v32 = vld [vmem:[#allocation5 + $0xc0] sm:$0xff] }
 0x1a1   : > { %4758 = vmatpush3.bf16.msra.mxu1 %v4755_v35  ;;  %v1142_v35 = vld [vmem:[#allocation2 + $0x300] sm:$0xff] }
 0x1a2   : > { %4760 = vmatprep.subr.bf16.mxu1 %v4759_v38  ;;  %v4679_v37 = vpack.c.bf16 %v1143_v36, %v1142_v35  ;;  %v1446_v35 = vld [vmem:[#allocation5 + $0xd0] sm:$0xff]  ;;  %v1447_v36 = vld [vmem:[#allocation5 + $0xd8] sm:$0xff] }
 0x1a5   : > { %4762 = vmatpush3.bf16.msra.mxu1 %v4759_v38  ;;  %v1144_v38 = vld [vmem:[#allocation2 + $0x310] sm:$0xff] }
 0x1a6   : > { %4764 = vmatprep.subr.bf16.mxu1 %v4763_v41  ;;  %v4683_v40 = vpack.c.bf16 %v1145_v39, %v1144_v38  ;;  %v1448_v38 = vld [vmem:[#allocation5 + $0xe0] sm:$0xff] }
 0x1a9   : > { %4766 = vmatpush3.bf16.msra.mxu1 %v4763_v41  ;;  %v1146_v41 = vld [vmem:[#allocation2 + $0x320] sm:$0xff] }
 0x1aa   : > { %4768 = vmatprep.subr.bf16.mxu1 %v4767_v45  ;;  %v4687_v44 = vpack.c.bf16 %v1147_v42, %v1146_v41  ;;  %v1451_v41 = vld [vmem:[#allocation5 + $0xf8] sm:$0xff]  ;;  %v1547_v42 = vld [vmem:[#allocation5 + $0x170] sm:$0xff] }
 0x1ad   : > { %4770 = vmatpush3.bf16.msra.mxu1 %v4767_v45  ;;  %v1148_v45 = vld [vmem:[#allocation2 + $0x330] sm:$0xff] }
 0x1ae   : > { %4772 = vmatprep.subr.bf16.mxu1 %v4771_v47  ;;  %v4691_v46 = vpack.c.bf16 %v1149_v43, %v1148_v45  ;;  %v1548_v45 = vld [vmem:[#allocation5 + $0x178] sm:$0xff] }
 0x1af   : > { %v4835_v43 = vpack.c.bf16 %v1548_v45, %v1547_v42 }
 0x1b1   : > { %4774 = vmatpush3.bf16.msra.mxu1 %v4771_v47  ;;  %v1150_v47 = vld [vmem:[#allocation2 + $0x340] sm:$0xff] }
 0x1b2   : > { %4808 = vmatprep.subr.bf16.mxu1 %v4807_v59 }
 0x1b4   : > { %4276 = vmatmul.mubr.f32.vlgmr.msra.gmra.mrb[8].mxu1 %v1338_v0  ;;  %v1237_v0 = vld [vmem:[#allocation2 + $0x390] sm:$0xff] }
 0x1b5   : > { %4810 = vmatpush3.bf16.msra.mxu1 %v4807_v59  ;;  %v1157_v59 = vld [vmem:[#allocation2 + $0x378] sm:$0xff] }
 0x267   : > { %v4089_v54 = vpop.f32.mrb[6].mxu1 }
 0x268   : > { %v5568_v55 = vadd.f32 %v4089_v54, %v3576_v53  ;;  %v844_v56 = vpop.f32.mrb[7].mxu1 }
 0x269   : > { %v5570_v57 = vadd.f32 %v3576_v53, %v844_v56  ;;  %v4651_v56 = vpack.c.bf16 %v963_v50, %v962_v49  ;;  %v1151_v49 = vld [vmem:[#allocation2 + $0x348] sm:$0xff] }
 0x26a   : > { %v863_v58 = vmax.f32 %v5568_v55, 0.0  ;;  %v4695_v50 = vpack.c.bf16 %v1151_v49, %v1150_v47  ;;  %v4699_v55 = vpack.c.bf16 %v1153_v52, %v1152_v51  ;;  %v3584_v47 = vld [vmem:[%s6018_s6 + $0x2] ss:$0 sm:$0xff]  ;;  %v3583_v51 = vld [vmem:[%s6018_s6 + $0x1] ss:$0 sm:$0xff] }
 0x26b   : > { %v862_v61 = vmax.f32 %v5570_v57, 0.0  ;;  %v4815_v57 = vpack.c.bf16 %v1538_v7, %v1537_v6  ;;  %v1240_v6 = vld [vmem:[#allocation2 + $0x3a8] sm:$0xff] }
 0x26d   : > { %v4611_v48 = vpack.c.bf16 %v863_v58, %v862_v61 }
 0x26f   : > { %4612 = vmatprep.subr.bf16.mxu0 %v4611_v48 }
 0x270   : > { %4614 = vmatpush3.bf16.msra.mxu0 %v4611_v48  ;;  %v1536_v48 = vld [vmem:[#allocation5 + $0x118] sm:$0xff] }
 0x271   : > { %4616 = vmatprep.subr.bf16.mxu0 %v4615_v62  ;;  %v4811_v3 = vpack.c.bf16 %v1536_v48, %v1535_v60  ;;  %v1235_v48 = vld [vmem:[#allocation2 + $0x380] sm:$0xff] }
 0x273   : > { %4095 = vmatmul.mubr.msk.f32.vlgmr.msra.gmra.mrb[0].mxu0 %vm373_vm0, %v5530_v8  ;;  %v4631_v8 = vpack.c.bf16 %v985_v12, %v984_v11  ;;  %v967_v11 = vld [vmem:[#allocation2 + $0x238] sm:$0xff]  ;;  %4812 = vmatprep.subr.bf16.mxu1 %v4811_v3 }
 0x274   : > { %4097 = vmatprep.mubr.msk.f32.mxu0 %vm373_vm0, %v5533_v10  ;;  %4618 = vmatpush3.bf16.msra.mxu0 %v4615_v62  ;;  %v986_v10 = vld [vmem:[#allocation2 + $0x2d0] sm:$0xff]  ;;  %v964_v62 = vld [vmem:[#allocation2 + $0x220] sm:$0xff] }
 0x275   : > { %4620 = vmatprep.subr.bf16.mxu0 %v4619_v2  ;;  %v4635_v16 = vpack.c.bf16 %v987_v13, %v986_v10  ;;  %v4655_v4 = vpack.c.bf16 %v965_v63, %v964_v62  ;;  %v1539_v10 = vld [vmem:[#allocation5 + $0x130] sm:$0xff]  ;;  %v1540_v13 = vld [vmem:[#allocation5 + $0x138] sm:$0xff]  ;;  %4814 = vmatpush3.bf16.msra.mxu1 %v4811_v3  ;;  %v1236_v62 = vld [vmem:[#allocation2 + $0x388] sm:$0xff] }
 0x276   : > { %4816 = vmatprep.subr.bf16.mxu1 %v4815_v57  ;;  %v4711_v63 = vpack.c.bf16 %v1236_v62, %v1235_v48  ;;  %v1238_v3 = vld [vmem:[#allocation2 + $0x398] sm:$0xff] }
 0x277   : > { %4098 = vmatmul.mubr.msk.f32.gmra.mrb[2].mxu0 %vm373_vm0, %v5540_v14  ;;  %v988_v14 = vld [vmem:[#allocation2 + $0x2e0] sm:$0xff] }
 0x278   : > { %4100 = vmatprep.mubr.msk.f32.mxu0 %vm373_vm0, %v5543_v15  ;;  %4622 = vmatpush3.bf16.msra.mxu0 %v4619_v2  ;;  %v4639_v15 = vpack.c.bf16 %v989_v17, %v988_v14  ;;  %v969_v14 = vld [vmem:[#allocation2 + $0x248] sm:$0xff]  ;;  %v4819_v17 = vpack.c.bf16 %v1540_v13, %v1539_v10 }
 0x279   : > { %4624 = vmatprep.subr.bf16.mxu0 %v4623_v5  ;;  %4818 = vmatpush3.bf16.msra.mxu1 %v4815_v57  ;;  %v1244_v10 = vld [vmem:[#allocation2 + $0x3c8] sm:$0xff] }
 0x27a   : > { %4820 = vmatprep.subr.bf16.mxu1 %v4819_v17 }
 0x27b   : > { %4101 = vmatmul.mubr.msk.f32.gmra.mrb[4].mxu0 %vm373_vm0, %v5550_v19  ;;  %v960_v19 = vld [vmem:[#allocation2 + $0x200] sm:$0xff] }
 0x27c   : > { %4626 = vmatpush3.bf16.msra.mxu0 %v4623_v5  ;;  %v4647_v1 = vpack.c.bf16 %v961_v22, %v960_v19  ;;  %v971_v19 = vld [vmem:[#allocation2 + $0x258] sm:$0xff]  ;;  %v4823_v22 = vpack.c.bf16 %v1542_v20, %v1541_v18  ;;  %v1249_v18 = vld [vmem:[#allocation2 + $0x3f0] sm:$0xff] }
 0x27d   : > { %4628 = vmatprep.subr.bf16.mxu0 %v4627_v9  ;;  %4822 = vmatpush3.bf16.msra.mxu1 %v4819_v17  ;;  %v1247_v17 = vld [vmem:[#allocation2 + $0x3e0] sm:$0xff]  ;;  %v1250_v20 = vld [vmem:[#allocation2 + $0x3f8] sm:$0xff] }
 0x27e   : > { %4824 = vmatprep.subr.bf16.mxu1 %v4823_v22 }
 0x280   : > { %4630 = vmatpush3.bf16.msra.mxu0 %v4627_v9  ;;  %v966_v9 = vld [vmem:[#allocation2 + $0x230] sm:$0xff] }
 0x281   : > { %4632 = vmatprep.subr.bf16.mxu0 %v4631_v8  ;;  %4826 = vmatpush3.bf16.msra.mxu1 %v4823_v22  ;;  %v1437_v22 = vld [vmem:[#allocation5 + $0x88] sm:$0xff] }
 0x282   : > { %4828 = vmatprep.subr.bf16.mxu1 %v4827_v27 }
 0x284   : > { %4634 = vmatpush3.bf16.msra.mxu0 %v4631_v8 }
 0x285   : > { %4636 = vmatprep.subr.bf16.mxu0 %v4635_v16  ;;  %4830 = vmatpush3.bf16.msra.mxu1 %v4827_v27  ;;  %v1441_v27 = vld [vmem:[#allocation5 + $0xa8] sm:$0xff] }
 0x286   : > { %4832 = vmatprep.subr.bf16.mxu1 %v4831_v33 }
 0x288   : > { %4638 = vmatpush3.bf16.msra.mxu0 %v4635_v16  ;;  %v968_v16 = vld [vmem:[#allocation2 + $0x240] sm:$0xff] }
 0x289   : > { %4640 = vmatprep.subr.bf16.mxu0 %v4639_v15  ;;  %4834 = vmatpush3.bf16.msra.mxu1 %v4831_v33  ;;  %v1445_v33 = vld [vmem:[#allocation5 + $0xc8] sm:$0xff] }
 0x28a   : > { %4836 = vmatprep.subr.bf16.mxu1 %v4835_v43 }
 0x28c   : > { %4642 = vmatpush3.bf16.msra.mxu0 %v4639_v15  ;;  %v4663_v15 = vpack.c.bf16 %v969_v14, %v968_v16  ;;  %v1245_v16 = vld [vmem:[#allocation2 + $0x3d0] sm:$0xff]  ;;  %v1246_v14 = vld [vmem:[#allocation2 + $0x3d8] sm:$0xff] }
 0x28d   : > { %4644 = vmatprep.subr.bf16.mxu0 %v4643_v21  ;;  %4838 = vmatpush3.bf16.msra.mxu1 %v4835_v43 }
 0x290   : > { %4646 = vmatpush3.bf16.msra.mxu0 %v4643_v21  ;;  %v970_v21 = vld [vmem:[#allocation2 + $0x250] sm:$0xff] }
 0x291   : > { %4648 = vmatprep.subr.bf16.mxu0 %v4647_v1 }
 0x346   : > { %v4096_v53 = vpop.f32.mrb[0].mxu0 }
 0x347   : > { %v930_v54 = vpop.f32.mrb[1].mxu0 }
 0x348   : > { %4135 = vmatprep.mubr.f32.mxu0 %v930_v54 }
 0x349   : > { %4136 = vmatmul.mubr.f32.vlgmr.msra.gmra.mrb[6].mxu0 %v4096_v53  ;;  %v1155_v53 = vld [vmem:[#allocation2 + $0x368] sm:$0xff] }
 0x34a   : > { %4650 = vmatpush3.bf16.msra.mxu0 %v4647_v1  ;;  %4170 = vmatprep.mubr.f32.mxu0 %v862_v61  ;;  %v5596_v2 = vpop.f32.mrb[2].mxu0  ;;  %v4659_v61 = vpack.c.bf16 %v967_v11, %v966_v9  ;;  %v4667_v1 = vpack.c.bf16 %v971_v19, %v970_v21  ;;  %v1241_v9 = vld [vmem:[#allocation2 + $0x3b0] sm:$0xff]  ;;  %v1242_v11 = vld [vmem:[#allocation2 + $0x3b8] sm:$0xff]  ;;  %v4739_v21 = vpack.c.bf16 %v1250_v20, %v1249_v18  ;;  %v1436_v19 = vld [vmem:[#allocation5 + $0x80] sm:$0xff] }
 0x34b   : > { %4652 = vmatprep.subr.bf16.mxu0 %v4651_v56  ;;  %v5598_v5 = vpop.f32.mrb[3].mxu0  ;;  %v4723_v57 = vpack.c.bf16 %v1242_v11, %v1241_v9 }
 0x34e   : > { %4654 = vmatpush3.bf16.msra.mxu0 %v4651_v56  ;;  %v5600_v12 = vpop.f32.mrb[4].mxu0  ;;  %v1156_v56 = vld [vmem:[#allocation2 + $0x370] sm:$0xff] }
 0x34f   : > { %4656 = vmatprep.subr.bf16.mxu0 %v4655_v4  ;;  %v5602_v8 = vpop.f32.mrb[5].mxu0  ;;  %v4707_v60 = vpack.c.bf16 %v1157_v59, %v1156_v56  ;;  %v3585_v56 = vld [vmem:[%s6018_s6 + $0x3] ss:$0 sm:$0xff]  ;;  %v3586_v59 = vld [vmem:[%s6018_s6 + $0x4] ss:$0 sm:$0xff] }
 0x352   : > { %4658 = vmatpush3.bf16.msra.mxu0 %v4655_v4  ;;  %v4715_v4 = vpack.c.bf16 %v1238_v3, %v1237_v0 }
 0x353   : > { %4660 = vmatprep.subr.bf16.mxu0 %v4659_v61 }
 0x356   : > { %4662 = vmatpush3.bf16.msra.mxu0 %v4659_v61  ;;  %v1243_v61 = vld [vmem:[#allocation2 + $0x3c0] sm:$0xff] }
 0x357   : > { %4664 = vmatprep.subr.bf16.mxu0 %v4663_v15  ;;  %v4727_v13 = vpack.c.bf16 %v1244_v10, %v1243_v61 }
 0x35a   : > { %4666 = vmatpush3.bf16.msra.mxu0 %v4663_v15  ;;  %v1248_v15 = vld [vmem:[#allocation2 + $0x3e8] sm:$0xff] }
 0x35b   : > { %4668 = vmatprep.subr.bf16.mxu0 %v4667_v1 }
 0x35e   : > { %4670 = vmatpush3.bf16.msra.mxu0 %v4667_v1  ;;  %v4775_v1 = vpack.c.bf16 %v1437_v22, %v1436_v19 }
 0x35f   : > { %4672 = vmatprep.subr.bf16.mxu0 %v4671_v28 }
 0x362   : > { %4674 = vmatpush3.bf16.msra.mxu0 %v4671_v28  ;;  %v4783_v28 = vpack.c.bf16 %v1441_v27, %v1440_v26 }
 0x363   : > { %4676 = vmatprep.subr.bf16.mxu0 %v4675_v34 }
 0x366   : > { %4678 = vmatpush3.bf16.msra.mxu0 %v4675_v34  ;;  %v4791_v34 = vpack.c.bf16 %v1445_v33, %v1444_v32 }
 0x367   : > { %4680 = vmatprep.subr.bf16.mxu0 %v4679_v37 }
 0x369   : > { %4171 = vmatmul.mubr.f32.vlgmr.msra.gmra.mrb[6].mxu0 %v863_v58  ;;  %v1154_v58 = vld [vmem:[#allocation2 + $0x360] sm:$0xff] }
 0x36a   : > { %4682 = vmatpush3.bf16.msra.mxu0 %v4679_v37  ;;  %4205 = vmatprep.mubr.f32.mxu0 %v5598_v5  ;;  %v4703_v54 = vpack.c.bf16 %v1155_v53, %v1154_v58  ;;  %v1239_v5 = vld [vmem:[#allocation2 + $0x3a0] sm:$0xff]  ;;  %v4795_v37 = vpack.c.bf16 %v1447_v36, %v1446_v35 }
 0x36b   : > { %4684 = vmatprep.subr.bf16.mxu0 %v4683_v40  ;;  %v4719_v7 = vpack.c.bf16 %v1240_v6, %v1239_v5 }
 0x36e   : > { %4686 = vmatpush3.bf16.msra.mxu0 %v4683_v40  ;;  %v1450_v40 = vld [vmem:[#allocation5 + $0xf0] sm:$0xff] }
 0x36f   : > { %4688 = vmatprep.subr.bf16.mxu0 %v4687_v44 }
 0x372   : > { %4690 = vmatpush3.bf16.msra.mxu0 %v4687_v44  ;;  %v4803_v44 = vpack.c.bf16 %v1451_v41, %v1450_v40 }
 0x373   : > { %4692 = vmatprep.subr.bf16.mxu0 %v4691_v46 }
 0x376   : > { %4694 = vmatpush3.bf16.msra.mxu0 %v4691_v46  ;;  %v4277_v46 = vpop.f32.mrb[8].mxu1 }
 0x377   : > { %4696 = vmatprep.subr.bf16.mxu0 %v4695_v50  ;;  %v5613_v49 = vadd.f32 %v4277_v46, %v3584_v47 }
 0x37a   : > { %4698 = vmatpush3.bf16.msra.mxu0 %v4695_v50  ;;  %v1426_v50 = vpop.f32.mrb[9].mxu1 }
 0x37b   : > { %4700 = vmatprep.subr.bf16.mxu0 %v4699_v55 }
 0x37e   : > { %4702 = vmatpush3.bf16.msra.mxu0 %v4699_v55 }
 0x37f   : > { %4704 = vmatprep.subr.bf16.mxu0 %v4703_v54 }
 0x382   : > { %4706 = vmatpush3.bf16.msra.mxu0 %v4703_v54  ;;  %v5628_v54 = vadd.f32 %v3584_v47, %v1426_v50 }
 0x383   : > { %4708 = vmatprep.subr.bf16.mxu0 %v4707_v60 }
 0x386   : > { %4710 = vmatpush3.bf16.msra.mxu0 %v4707_v60 }
 0x387   : > { %4712 = vmatprep.subr.bf16.mxu0 %v4711_v63 }
 0x389   : > { %4206 = vmatmul.mubr.f32.vlgmr.msra.gmra.mrb[6].mxu0 %v5596_v2  ;;  %v4731_v2 = vpack.c.bf16 %v1246_v14, %v1245_v16 }
 0x38a   : > { %4714 = vmatpush3.bf16.msra.mxu0 %v4711_v63  ;;  %4240 = vmatprep.mubr.f32.mxu0 %v5602_v8  ;;  %v4735_v8 = vpack.c.bf16 %v1248_v15, %v1247_v17 }
 0x38b   : > { %4716 = vmatprep.subr.bf16.mxu0 %v4715_v4 }
 0x38e   : > { %4718 = vmatpush3.bf16.msra.mxu0 %v4715_v4 }
 0x38f   : > { %4720 = vmatprep.subr.bf16.mxu0 %v4719_v7 }
 0x392   : > { %4722 = vmatpush3.bf16.msra.mxu0 %v4719_v7 }
 0x393   : > { %4724 = vmatprep.subr.bf16.mxu0 %v4723_v57 }
 0x396   : > { %4726 = vmatpush3.bf16.msra.mxu0 %v4723_v57 }
 0x397   : > { %4728 = vmatprep.subr.bf16.mxu0 %v4727_v13 }
 0x39a   : > { %4730 = vmatpush3.bf16.msra.mxu0 %v4727_v13 }
 0x39b   : > { %4732 = vmatprep.subr.bf16.mxu0 %v4731_v2 }
 0x39e   : > { %4734 = vmatpush3.bf16.msra.mxu0 %v4731_v2 }
 0x39f   : > { %4736 = vmatprep.subr.bf16.mxu0 %v4735_v8 }
 0x3a2   : > { %4738 = vmatpush3.bf16.msra.mxu0 %v4735_v8 }
 0x3a3   : > { %4740 = vmatprep.subr.bf16.mxu0 %v4739_v21 }
 0x3a6   : > { %4742 = vmatpush3.bf16.msra.mxu0 %v4739_v21 }
 0x3a7   : > { %4776 = vmatprep.subr.bf16.mxu0 %v4775_v1 }
 0x3a9   : > { %4241 = vmatmul.mubr.f32.vlgmr.msra.gmra.mrb[6].mxu0 %v5600_v12  ;;  %v1449_v12 = vld [vmem:[#allocation5 + $0xe8] sm:$0xff] }
 0x3aa   : > { %4778 = vmatpush3.bf16.msra.mxu0 %v4775_v1  ;;  %v4799_v39 = vpack.c.bf16 %v1449_v12, %v1448_v38 }
 0x3ab   : > { %4780 = vmatprep.subr.bf16.mxu0 %v4779_v25 }
 0x3ae   : > { %4782 = vmatpush3.bf16.msra.mxu0 %v4779_v25 }
 0x3af   : > { %4784 = vmatprep.subr.bf16.mxu0 %v4783_v28 }
 0x3b2   : > { %4786 = vmatpush3.bf16.msra.mxu0 %v4783_v28 }
 0x3b3   : > { %4788 = vmatprep.subr.bf16.mxu0 %v4787_v31 }
 0x3b6   : > { %4790 = vmatpush3.bf16.msra.mxu0 %v4787_v31 }
 0x3b7   : > { %4792 = vmatprep.subr.bf16.mxu0 %v4791_v34 }
 0x3ba   : > { %4794 = vmatpush3.bf16.msra.mxu0 %v4791_v34 }
 0x3bb   : > { %4796 = vmatprep.subr.bf16.mxu0 %v4795_v37 }
 0x3be   : > { %4798 = vmatpush3.bf16.msra.mxu0 %v4795_v37 }
 0x3bf   : > { %4800 = vmatprep.subr.bf16.mxu0 %v4799_v39 }
 0x3c2   : > { %4802 = vmatpush3.bf16.msra.mxu0 %v4799_v39 }
 0x3c3   : > { %4804 = vmatprep.subr.bf16.mxu0 %v4803_v44 }
 0x3c6   : > { %4806 = vmatpush3.bf16.msra.mxu0 %v4803_v44 }
 0x47c   : > { %v4242_v52 = vpop.f32.mrb[6].mxu0 }
 0x47d   : > { %v1334_v55 = vadd.f32 %v4242_v52, %v3583_v51  ;;  %v1317_v58 = vpop.f32.mrb[7].mxu0 }
 0x47e   : > { %v1333_v53 = vadd.f32 %v3583_v51, %v1317_v58 }
 0x47f   : > { %1336 = vst [vmem:[%s5624_s25 + $0x8] sm:$0xff] %v1334_v55 }
 0x480   : > { %1335 = vst [vmem:[%s5624_s25] sm:$0xff] %v1333_v53  ;;  %4310 = vmatprep.mubr.f32.mxu0 %v1333_v53  ;;  %4345 = vmatprep.mubr.f32.mxu1 %v1333_v53 }
 0x481   : > { %4311 = vmatmul.mubr.f32.vlgmr.msra.gmra.mrb[8].mxu0 %v1334_v55  ;;  %4346 = vmatmul.mubr.f32.vlgmr.msra.gmra.mrb[10].mxu1 %v1334_v55 }
 0x482   : > { %4352 = vmatprep.mubr.msk.f32.mxu0 %vm1629_vm1, %v5628_v54 }
 0x554   : > { %v4312_v60 = vpop.f32.mrb[8].mxu0  ;;  %v4347_v48 = vpop.f32.mrb[10].mxu1 }
 0x555   : > { %v1529_v62 = vadd.f32 %v4312_v60, %v3585_v56  ;;  %v1626_v63 = vadd.f32 %v4347_v48, %v3586_v59  ;;  %v1523_v0 = vpop.f32.mrb[9].mxu0  ;;  %v1620_v3 = vpop.f32.mrb[11].mxu1 }
 0x556   : > { %v1524_v4 = vadd.f32 %v3585_v56, %v1523_v0  ;;  %v1621_v5 = vadd.f32 %v3586_v59, %v1620_v3 }
 0x558   : > { %v5644_v7 = vpack.i.bf16 %v1529_v62, %v1524_v4  ;;  %v4839_v9 = vpack.c.bf16 %v1529_v62, %v1524_v4  ;;  %v4845_v11 = vpack.c.bf16 %v1626_v63, %v1621_v5  ;;  %v5646_v57 = vpack.i.bf16 %v1626_v63, %v1621_v5 }
 0x55a   : > { %5031 = vrot.lane.b32.xlu1 %v5644_v7, %s5328_s18  ;;  %4841 = vmatprep.subr.msk.bf16.mxu0 %vm5640_vm2, %v4839_v9 }
 0x55b   : > { %4844 = vmatpush3.bf16.xpose.msk.msra.mxu0 %vm5640_vm2, %v4839_v9 }
 0x55c   : > { %4846 = vmatprep.subr.bf16.mxu0 %v4845_v11 }
 0x55e   : > { %1820 = vrot.lane.b32.xlu1 %v5628_v54, %s5328_s18 }
 0x562   : > { %1822 = vrot.lane.b32.xlu1 %v5613_v49, %s5328_s18  ;;  %4353 = vmatmul.mubr.msk.f32.vlgmr.msra.gmra.mrb[10].mxu0 %vm1629_vm1, %v5613_v49 }
 0x563   : > { %4848 = vmatpush3.bf16.msra.mxu0 %v4845_v11 }
 0x566   : > { %2022 = vrot.lane.b32.xlu1 %v5628_v54, %s5329_s19 }
 0x56a   : > { %2024 = vrot.lane.b32.xlu1 %v5613_v49, %s5329_s19 }
 0x56e   : > { %5046 = vrot.lane.b32.xlu1 %v5646_v57, %s5329_s19 }
 0x5cc   : > { %v5032_v61 = vpop.permute.xlu1 %5031 }
 0x5cd   : > { %v5034_v10 = vunpack.i.h.bf16 %v5032_v61  ;;  %v5033_v13 = vunpack.i.l.bf16 %v5032_v61 }
 0x5cf   : > { %v4849_v16 = vpack.c.bf16 %v5034_v10, %v5033_v13 }
 0x5d0   : > { %v1821_v24 = vpop.permute.xlu1 %1820 }
 0x5d1   : > { %4851 = vmatprep.subr.msk.bf16.mxu0 %vm5640_vm2, %v4849_v16 }
 0x5d4   : > { %v1823_v29 = vpop.permute.xlu1 %1822 }
 0x5d8   : > { %v2023_v30 = vpop.permute.xlu1 %2022 }
 0x5dc   : > { %v2025_v31 = vpop.permute.xlu1 %2024 }
 0x5e0   : > { %v5047_v41 = vpop.permute.xlu1 %5046 }
 0x5e1   : > { %v5049_v51 = vunpack.i.h.bf16 %v5047_v41  ;;  %v5048_v52 = vunpack.i.l.bf16 %v5047_v41 }
 0x5e3   : > { %v4865_v59 = vpack.c.bf16 %v5049_v51, %v5048_v52 }
 0x635   : > { %v4354_v14 = vpop.f32.mrb[10].mxu0 }
 0x636   : > { %v1708_v2 = vpop.f32.mrb[11].mxu0  ;;  %v1720_v15 = vsel %vm373_vm0, %v4354_v14, -inf }
 0x637   : > { %v1717_v17 = vsel %vm373_vm0, %v1708_v2, -inf }
 0x638   : > { %1718 = vmax.xlane.f32.xlu0 %v1717_v17 }
 0x63c   : > { %1721 = vmax.xlane.f32.xlu0 %v1720_v15 }
 0x652   : > { %5036 = vrot.lane.b32.xlu0 %v5644_v7, %s5329_s19  ;;  %s3395_s19 = scalar_lea.sflag [#allocation4], %s5616_s21 }
 0x6c5   : > { %v1719_v8 = vpop.xlane.xlu0 %1718 }
 0x6c6   : > { %v1723_v18 = vsub.f32 %v1708_v2, %v1719_v8 }
 0x6c8   : > { %v1725_v20 = vmul.f32 1.442695, %v1723_v18 }
 0x6c9   : > { %v1722_v21 = vpop.xlane.xlu0 %1721 }
 0x6ca   : > { %5100 = vpow2.f32 %v1725_v20  ;;  %v1724_v19 = vsub.f32 %v4354_v14, %v1722_v21 }
 0x6cc   : > { %v1727_v22 = vmul.f32 1.442695, %v1724_v19 }
 0x6cd   : > { %v5037_v1 = vpop.permute.xlu0 %5036 }
 0x6ce   : > { %5102 = vpow2.f32 %v1727_v22  ;;  %v5039_v25 = vunpack.i.h.bf16 %v5037_v1  ;;  %v5038_v26 = vunpack.i.l.bf16 %v5037_v1 }
 0x6d0   : > { %v4859_v28 = vpack.c.bf16 %v5039_v25, %v5038_v26 }
 0x6d4   : > { %v5668_v23 = vpop.eup %5100 }
 0x6d5   : > { %4359 = vmatprep.mubr.msk.f32.mxu0 %vm373_vm0, %v5668_v23 }
 0x6d8   : > { %v5672_v27 = vpop.eup %5102 }
 0x6d9   : > { %4360 = vmatmul.mubr.msk.f32.vlgmr.msra.gmra.mrb[12].mxu0 %vm373_vm0, %v5672_v27 }
 0x6da   : > { %4854 = vmatpush3.bf16.xpose.msk.msra.mxu0 %vm5640_vm2, %v4849_v16  ;;  %4366 = vmatprep.mubr.msk.f32.mxu0 %vm1629_vm1, %v1821_v24 }
 0x6db   : > { %4861 = vmatprep.subr.msk.bf16.mxu0 %vm5640_vm2, %v4859_v28 }
 0x6e1   : > { %4367 = vmatmul.mubr.msk.f32.vlgmr.msra.gmra.mrb[14].mxu0 %vm1629_vm1, %v1823_v29 }
 0x6e2   : > { %4864 = vmatpush3.bf16.xpose.msk.msra.mxu0 %vm5640_vm2, %v4859_v28  ;;  %4380 = vmatprep.mubr.msk.f32.mxu0 %vm1629_vm1, %v2023_v30 }
 0x6e9   : > { %4381 = vmatmul.mubr.msk.f32.vlgmr.msra.gmra.mrb[16].mxu0 %vm1629_vm1, %v2025_v31 }
 0x7ac   : > { %v5686_v32 = vpop.f32.mrb[12].mxu0 }
 0x7ad   : > { %v5688_v33 = vpop.f32.mrb[13].mxu0 }
 0x7b4   : > { %v4368_v34 = vpop.f32.mrb[14].mxu0 }
 0x7b5   : > { %v1902_v35 = vpop.f32.mrb[15].mxu0  ;;  %v1914_v36 = vsel %vm373_vm0, %v4368_v34, -inf }
 0x7b6   : > { %1915 = vmax.xlane.f32.xlu0 %v1914_v36  ;;  %v1911_v37 = vsel %vm373_vm0, %v1902_v35, -inf }
 0x7b7   : > { %1912 = vmax.xlane.f32.xlu1 %v1911_v37 }
 0x7bc   : > { %v4382_v38 = vpop.f32.mrb[16].mxu0 }
 0x7bd   : > { %v2104_v12 = vpop.f32.mrb[17].mxu0  ;;  %v2116_v39 = vsel %vm373_vm0, %v4382_v38, -inf }
 0x7be   : > { %2117 = vmax.xlane.f32.xlu1 %v2116_v39  ;;  %v2113_v40 = vsel %vm373_vm0, %v2104_v12, -inf }
 0x7c2   : > { %2114 = vmax.xlane.f32.xlu1 %v2113_v40 }
 0x7cc   : > { %5041 = vrot.lane.b32.xlu0 %v5646_v57, %s5328_s18  ;;  %s5340_s18 = smov 48  }
 0x7d0   : > { %2222 = vrot.lane.b32.xlu0 %v5628_v54, %s5330_s29 }
 0x7d3   : > { %5051 = vrot.lane.b32.xlu1 %v5644_v7, %s5330_s29 }
 0x7d7   : > { %2224 = vrot.lane.b32.xlu1 %v5613_v49, %s5330_s29 }
 0x843   : > { %v1916_v42 = vpop.xlane.xlu0 %1915 }
 0x844   : > { %v1918_v44 = vsub.f32 %v4368_v34, %v1916_v42  ;;  %v1913_v45 = vpop.xlane.xlu1 %1912 }
 0x845   : > { %v1917_v43 = vsub.f32 %v1902_v35, %v1913_v45 }
 0x846   : > { %v1921_v46 = vmul.f32 1.442695, %v1918_v44 }
 0x847   : > { %v1919_v47 = vmul.f32 1.442695, %v1917_v43  ;;  %v5042_v50 = vpop.permute.xlu0 %5041 }
 0x848   : > { %v5044_v55 = vunpack.i.h.bf16 %v5042_v50  ;;  %v5043_v58 = vunpack.i.l.bf16 %v5042_v50 }
 0x849   : > { %5104 = vpow2.f32 %v1919_v47 }
 0x84a   : > { %5106 = vpow2.f32 %v1921_v46  ;;  %v4855_v53 = vpack.c.bf16 %v5044_v55, %v5043_v58 }
 0x84b   : > { %v2118_v56 = vpop.xlane.xlu1 %2117  ;;  %v2223_v16 = vpop.permute.xlu0 %2222 }
 0x84c   : > { %4856 = vmatprep.subr.bf16.mxu1 %v4855_v53  ;;  %v2120_v60 = vsub.f32 %v4382_v38, %v2118_v56 }
 0x84d   : > { %4858 = vmatpush3.bf16.msra.mxu1 %v4855_v53 }
 0x84e   : > { %4866 = vmatprep.subr.bf16.mxu1 %v4865_v59  ;;  %v2123_v63 = vmul.f32 1.442695, %v2120_v60 }
 0x84f   : > { %v2115_v48 = vpop.xlane.xlu1 %2114 }
 0x850   : > { %v2119_v62 = vsub.f32 %v2104_v12, %v2115_v48 }
 0x852   : > { %v2121_v0 = vmul.f32 1.442695, %v2119_v62 }
 0x853   : > { %v5702_v3 = vpop.eup %5104  ;;  %v5052_v4 = vpop.permute.xlu1 %5051 }
 0x854   : > { %v5704_v5 = vpop.eup %5106  ;;  %5108 = vpow2.f32 %v2121_v0  ;;  %v5054_v9 = vunpack.i.h.bf16 %v5052_v4  ;;  %v5053_v11 = vunpack.i.l.bf16 %v5052_v4  ;;  %4373 = vmatprep.mubr.msk.f32.mxu1 %vm373_vm0, %v5702_v3 }
 0x855   : > { %5110 = vpow2.f32 %v2123_v63  ;;  %4374 = vmatmul.mubr.msk.f32.vlgmr.msra.gmra.mrb[12].mxu1 %vm373_vm0, %v5704_v5  ;;  %v1926_v6 = vsel %vm373_vm0, %v5704_v5, 0.0 }
 0x856   : > { %v4869_v61 = vpack.c.bf16 %v5054_v9, %v5053_v11  ;;  %4868 = vmatpush3.bf16.msra.mxu1 %v4865_v59 }
 0x857   : > { %v2225_v14 = vpop.permute.xlu1 %2224 }
 0x858   : > { %4871 = vmatprep.subr.msk.bf16.mxu1 %vm5640_vm2, %v4869_v61 }
 0x85e   : > { %v5712_v10 = vpop.eup %5108 }
 0x85f   : > { %v5714_v13 = vpop.eup %5110  ;;  %4387 = vmatprep.mubr.msk.f32.mxu1 %vm373_vm0, %v5712_v10 }
 0x860   : > { %4388 = vmatmul.mubr.msk.f32.vlgmr.msra.gmra.mrb[14].mxu1 %vm373_vm0, %v5714_v13 }
 0x861   : > { %4874 = vmatpush3.bf16.xpose.msk.msra.mxu1 %vm5640_vm2, %v4869_v61  ;;  %4394 = vmatprep.mubr.msk.f32.mxu1 %vm1629_vm1, %v2223_v16 }
 0x868   : > { %4395 = vmatmul.mubr.msk.f32.vlgmr.msra.gmra.mrb[16].mxu1 %vm1629_vm1, %v2225_v14 }
 0x928   : > { %v5724_v2 = vpop.f32.mrb[12].mxu1 }
 0x929   : > { %v5726_v17 = vpop.f32.mrb[13].mxu1 }
 0x933   : > { %v5728_v15 = vpop.f32.mrb[14].mxu1 }
 0x934   : > { %v5730_v8 = vpop.f32.mrb[15].mxu1 }
 0x93b   : > { %v4396_v18 = vpop.f32.mrb[16].mxu1 }
 0x93c   : > { %v2304_v20 = vpop.f32.mrb[17].mxu1  ;;  %v2316_v21 = vsel %vm373_vm0, %v4396_v18, -inf }
 0x93d   : > { %2317 = vmax.xlane.f32.xlu1 %v2316_v21  ;;  %v2313_v19 = vsel %vm373_vm0, %v2304_v20, -inf }
 0x93e   : > { %2314 = vmax.xlane.f32.xlu0 %v2313_v19 }
 0x94e   : > { %5061 = vrot.lane.b32.xlu1 %v5644_v7, %s5331_s14 }
 0x952   : > { %2424 = vrot.lane.b32.xlu1 %v5613_v49, %s5331_s14 }
 0x954   : > { %5056 = vrot.lane.b32.xlu0 %v5646_v57, %s5330_s29 }
 0x958   : > { %2422 = vrot.lane.b32.xlu0 %v5628_v54, %s5331_s14 }
 0x9ca   : > { %v2318_v22 = vpop.xlane.xlu1 %2317 }
 0x9cb   : > { %v2320_v1 = vsub.f32 %v4396_v18, %v2318_v22  ;;  %v2315_v24 = vpop.xlane.xlu0 %2314 }
 0x9cc   : > { %v2319_v25 = vsub.f32 %v2304_v20, %v2315_v24 }
 0x9cd   : > { %v2323_v26 = vmul.f32 1.442695, %v2320_v1 }
 0x9ce   : > { %v2321_v28 = vmul.f32 1.442695, %v2319_v25  ;;  %v5062_v29 = vpop.permute.xlu1 %5061 }
 0x9cf   : > { %v5064_v30 = vunpack.i.h.bf16 %v5062_v29  ;;  %v5057_v31 = vpop.permute.xlu0 %5056  ;;  %v5063_v34 = vunpack.i.l.bf16 %v5062_v29 }
 0x9d0   : > { %5112 = vpow2.f32 %v2321_v28  ;;  %v5059_v35 = vunpack.i.h.bf16 %v5057_v31  ;;  %v5058_v36 = vunpack.i.l.bf16 %v5057_v31 }
 0x9d1   : > { %5114 = vpow2.f32 %v2323_v26  ;;  %v4879_v38 = vpack.c.bf16 %v5064_v30, %v5063_v34 }
 0x9d2   : > { %v4875_v37 = vpack.c.bf16 %v5059_v35, %v5058_v36  ;;  %v2425_v41 = vpop.permute.xlu1 %2424 }
 0x9d3   : > { %v2423_v40 = vpop.permute.xlu0 %2422 }
 0x9d4   : > { %4876 = vmatprep.subr.bf16.mxu0 %v4875_v37 }
 0x9d5   : > { %4878 = vmatpush3.bf16.msra.mxu0 %v4875_v37 }
 0x9d6   : > { %4881 = vmatprep.subr.msk.bf16.mxu0 %vm5640_vm2, %v4879_v38 }
 0x9da   : > { %v5744_v12 = vpop.eup %5112 }
 0x9db   : > { %v5746_v39 = vpop.eup %5114  ;;  %4401 = vmatprep.mubr.msk.f32.mxu0 %vm373_vm0, %v5744_v12 }
 0x9dc   : > { %4402 = vmatmul.mubr.msk.f32.vlgmr.msra.gmra.mrb[18].mxu0 %vm373_vm0, %v5746_v39 }
 0x9dd   : > { %4408 = vmatprep.mubr.msk.f32.mxu0 %vm1629_vm1, %v2423_v40 }
 0x9de   : > { %4884 = vmatpush3.bf16.xpose.msk.msra.mxu0 %vm5640_vm2, %v4879_v38 }
 0x9e5   : > { %4409 = vmatmul.mubr.msk.f32.vlgmr.msra.gmra.mrb[20].mxu0 %vm1629_vm1, %v2425_v41 }
 0xaaf   : > { %v5756_v42 = vpop.f32.mrb[18].mxu0 }
 0xab0   : > { %v5758_v44 = vpop.f32.mrb[19].mxu0 }
 0xab8   : > { %v4410_v45 = vpop.f32.mrb[20].mxu0 }
 0xab9   : > { %v2504_v43 = vpop.f32.mrb[21].mxu0  ;;  %v2516_v46 = vsel %vm373_vm0, %v4410_v45, -inf }
 0xaba   : > { %2517 = vmax.xlane.f32.xlu1 %v2516_v46  ;;  %v2513_v47 = vsel %vm373_vm0, %v2504_v43, -inf }
 0xabb   : > { %2514 = vmax.xlane.f32.xlu0 %v2513_v47 }
 0xacb   : > { %5071 = vrot.lane.b32.xlu1 %v5644_v7, %s5332_s20 }
 0xacf   : > { %2624 = vrot.lane.b32.xlu1 %v5613_v49, %s5332_s20 }
 0xad1   : > { %5066 = vrot.lane.b32.xlu0 %v5646_v57, %s5331_s14  ;;  %s5342_s14 = smov [#allocation7]  }
 0xad5   : > { %2622 = vrot.lane.b32.xlu0 %v5628_v54, %s5332_s20 }
 0xb47   : > { %v2518_v50 = vpop.xlane.xlu1 %2517 }
 0xb48   : > { %v2520_v51 = vsub.f32 %v4410_v45, %v2518_v50  ;;  %v2515_v52 = vpop.xlane.xlu0 %2514 }
 0xb49   : > { %v2519_v55 = vsub.f32 %v2504_v43, %v2515_v52 }
 0xb4a   : > { %v2523_v58 = vmul.f32 1.442695, %v2520_v51 }
 0xb4b   : > { %v2521_v53 = vmul.f32 1.442695, %v2519_v55  ;;  %v5072_v56 = vpop.permute.xlu1 %5071 }
 0xb4c   : > { %v5074_v59 = vunpack.i.h.bf16 %v5072_v56  ;;  %v5067_v60 = vpop.permute.xlu0 %5066  ;;  %v5073_v48 = vunpack.i.l.bf16 %v5072_v56 }
 0xb4d   : > { %5116 = vpow2.f32 %v2521_v53  ;;  %v5069_v62 = vunpack.i.h.bf16 %v5067_v60  ;;  %v5068_v63 = vunpack.i.l.bf16 %v5067_v60 }
 0xb4e   : > { %5118 = vpow2.f32 %v2523_v58  ;;  %v4889_v4 = vpack.c.bf16 %v5074_v59, %v5073_v48 }
 0xb4f   : > { %v4885_v0 = vpack.c.bf16 %v5069_v62, %v5068_v63  ;;  %v2625_v16 = vpop.permute.xlu1 %2624 }
 0xb50   : > { %v2623_v61 = vpop.permute.xlu0 %2622 }
 0xb51   : > { %4886 = vmatprep.subr.bf16.mxu1 %v4885_v0 }
 0xb52   : > { %4888 = vmatpush3.bf16.msra.mxu1 %v4885_v0 }
 0xb53   : > { %4891 = vmatprep.subr.msk.bf16.mxu1 %vm5640_vm2, %v4889_v4 }
 0xb57   : > { %v5772_v9 = vpop.eup %5116 }
 0xb58   : > { %v5774_v11 = vpop.eup %5118  ;;  %4415 = vmatprep.mubr.msk.f32.mxu1 %vm373_vm0, %v5772_v9 }
 0xb59   : > { %4416 = vmatmul.mubr.msk.f32.vlgmr.msra.gmra.mrb[18].mxu1 %vm373_vm0, %v5774_v11  ;;  %v2528_v5 = vsel %vm373_vm0, %v5774_v11, 0.0 }
 0xb5a   : > { %4422 = vmatprep.mubr.msk.f32.mxu1 %vm1629_vm1, %v2623_v61 }
 0xb5b   : > { %4894 = vmatpush3.bf16.xpose.msk.msra.mxu1 %vm5640_vm2, %v4889_v4 }
 0xb62   : > { %4423 = vmatmul.mubr.msk.f32.vlgmr.msra.gmra.mrb[20].mxu1 %vm1629_vm1, %v2625_v16 }
 0xc2c   : > { %v5784_v14 = vpop.f32.mrb[18].mxu1 }
 0xc2d   : > { %v5786_v18 = vpop.f32.mrb[19].mxu1 }
 0xc35   : > { %v4424_v20 = vpop.f32.mrb[20].mxu1 }
 0xc36   : > { %v2704_v21 = vpop.f32.mrb[21].mxu1  ;;  %v2716_v19 = vsel %vm373_vm0, %v4424_v20, -inf }
 0xc37   : > { %2717 = vmax.xlane.f32.xlu1 %v2716_v19  ;;  %v2713_v22 = vsel %vm373_vm0, %v2704_v21, -inf }
 0xc38   : > { %2714 = vmax.xlane.f32.xlu0 %v2713_v22 }
 0xc48   : > { %5081 = vrot.lane.b32.xlu1 %v5644_v7, %s5333_s22 }
 0xc4c   : > { %2824 = vrot.lane.b32.xlu1 %v5613_v49, %s5333_s22 }
 0xc4e   : > { %5076 = vrot.lane.b32.xlu0 %v5646_v57, %s5332_s20 }
 0xc52   : > { %2822 = vrot.lane.b32.xlu0 %v5628_v54, %s5333_s22 }
 0xcc4   : > { %v2718_v1 = vpop.xlane.xlu1 %2717 }
 0xcc5   : > { %v2720_v24 = vsub.f32 %v4424_v20, %v2718_v1  ;;  %v2715_v25 = vpop.xlane.xlu0 %2714 }
 0xcc6   : > { %v2719_v26 = vsub.f32 %v2704_v21, %v2715_v25 }
 0xcc7   : > { %v2723_v28 = vmul.f32 1.442695, %v2720_v24 }
 0xcc8   : > { %v2721_v29 = vmul.f32 1.442695, %v2719_v26  ;;  %v5082_v30 = vpop.permute.xlu1 %5081 }
 0xcc9   : > { %v5084_v31 = vunpack.i.h.bf16 %v5082_v30  ;;  %v5077_v34 = vpop.permute.xlu0 %5076  ;;  %v5083_v35 = vunpack.i.l.bf16 %v5082_v30  ;;  %v1923_v30 = vsel %vm373_vm0, %v5702_v3, 0.0  ;;  %v2525_v3 = vsel %vm373_vm0, %v5772_v9, 0.0 }
 0xcca   : > { %5120 = vpow2.f32 %v2721_v29  ;;  %v5079_v36 = vunpack.i.h.bf16 %v5077_v34  ;;  %v5078_v37 = vunpack.i.l.bf16 %v5077_v34  ;;  %v2128_v34 = vsel %vm373_vm0, %v5714_v13, 0.0 }
 0xccb   : > { %5122 = vpow2.f32 %v2723_v28  ;;  %v4899_v40 = vpack.c.bf16 %v5084_v31, %v5083_v35  ;;  %v2125_v31 = vsel %vm373_vm0, %v5712_v10, 0.0  ;;  %v2328_v35 = vsel %vm373_vm0, %v5746_v39, 0.0 }
 0xccc   : > { %v4895_v38 = vpack.c.bf16 %v5079_v36, %v5078_v37  ;;  %v2825_v46 = vpop.permute.xlu1 %2824  ;;  %v2325_v9 = vsel %vm373_vm0, %v5744_v12, 0.0 }
 0xccd   : > { %v2823_v43 = vpop.permute.xlu0 %2822 }
 0xcce   : > { %4896 = vmatprep.subr.bf16.mxu0 %v4895_v38 }
 0xccf   : > { %4898 = vmatpush3.bf16.msra.mxu0 %v4895_v38 }
 0xcd0   : > { %4901 = vmatprep.subr.msk.bf16.mxu0 %vm5640_vm2, %v4899_v40 }
 0xcd4   : > { %v5800_v41 = vpop.eup %5120 }
 0xcd5   : > { %v5802_v45 = vpop.eup %5122  ;;  %4429 = vmatprep.mubr.msk.f32.mxu0 %vm373_vm0, %v5800_v41  ;;  %v2725_v10 = vsel %vm373_vm0, %v5800_v41, 0.0 }
 0xcd6   : > { %4430 = vmatmul.mubr.msk.f32.vlgmr.msra.gmra.mrb[22].mxu0 %vm373_vm0, %v5802_v45  ;;  %v2728_v13 = vsel %vm373_vm0, %v5802_v45, 0.0 }
 0xcd7   : > { %4436 = vmatprep.mubr.msk.f32.mxu0 %vm1629_vm1, %v2823_v43 }
 0xcd8   : > { %4904 = vmatpush3.bf16.xpose.msk.msra.mxu0 %vm5640_vm2, %v4899_v40 }
 0xcdf   : > { %4437 = vmatmul.mubr.msk.f32.vlgmr.msra.gmra.mrb[24].mxu0 %vm1629_vm1, %v2825_v46 }
 0xda9   : > { %v5812_v47 = vpop.f32.mrb[22].mxu0 }
 0xdaa   : > { %v5814_v50 = vpop.f32.mrb[23].mxu0 }
 0xdb2   : > { %v4438_v51 = vpop.f32.mrb[24].mxu0 }
 0xdb3   : > { %v2904_v52 = vpop.f32.mrb[25].mxu0  ;;  %v2916_v55 = vsel %vm373_vm0, %v4438_v51, -inf }
 0xdb4   : > { %2917 = vmax.xlane.f32.xlu1 %v2916_v55  ;;  %v2913_v58 = vsel %vm373_vm0, %v2904_v52, -inf }
 0xdb5   : > { %2914 = vmax.xlane.f32.xlu0 %v2913_v58 }
 0xdc5   : > { %5091 = vrot.lane.b32.xlu1 %v5644_v7, %s5334_s23 }
 0xdc9   : > { %3024 = vrot.lane.b32.xlu1 %v5613_v49, %s5334_s23 }
 0xdcb   : > { %5086 = vrot.lane.b32.xlu0 %v5646_v57, %s5333_s22 }
 0xdcf   : > { %3022 = vrot.lane.b32.xlu0 %v5628_v54, %s5334_s23 }
 0xe41   : > { %v2918_v53 = vpop.xlane.xlu1 %2917 }
 0xe42   : > { %v2920_v56 = vsub.f32 %v4438_v51, %v2918_v53  ;;  %v2915_v59 = vpop.xlane.xlu0 %2914 }
 0xe43   : > { %v2919_v60 = vsub.f32 %v2904_v52, %v2915_v59 }
 0xe44   : > { %v2923_v48 = vmul.f32 1.442695, %v2920_v56 }
 0xe45   : > { %v2921_v62 = vmul.f32 1.442695, %v2919_v60  ;;  %v5092_v63 = vpop.permute.xlu1 %5091 }
 0xe46   : > { %v5094_v0 = vunpack.i.h.bf16 %v5092_v63  ;;  %v5087_v4 = vpop.permute.xlu0 %5086  ;;  %v5093_v7 = vunpack.i.l.bf16 %v5092_v63  ;;  %v1729_v63 = vsel %vm373_vm0, %v5668_v23, 0.0 }
 0xe47   : > { %5124 = vpow2.f32 %v2921_v62  ;;  %v5089_v61 = vunpack.i.h.bf16 %v5087_v4  ;;  %v5088_v16 = vunpack.i.l.bf16 %v5087_v4  ;;  %v1732_v62 = vsel %vm373_vm0, %v5672_v27, 0.0 }
 0xe48   : > { %5126 = vpow2.f32 %v2923_v48  ;;  %v4909_v20 = vpack.c.bf16 %v5094_v0, %v5093_v7 }
 0xe49   : > { %v4905_v49 = vpack.c.bf16 %v5089_v61, %v5088_v16  ;;  %v3025_v22 = vpop.permute.xlu1 %3024 }
 0xe4a   : > { %v3023_v19 = vpop.permute.xlu0 %3022 }
 0xe4b   : > { %4906 = vmatprep.subr.bf16.mxu1 %v4905_v49 }
 0xe4c   : > { %4908 = vmatpush3.bf16.msra.mxu1 %v4905_v49 }
 0xe4d   : > { %4911 = vmatprep.subr.msk.bf16.mxu1 %vm5640_vm2, %v4909_v20 }
 0xe51   : > { %v5125_v54 = vpop.eup %5124 }
 0xe52   : > { %v5127_v21 = vpop.eup %5126  ;;  %4443 = vmatprep.mubr.msk.f32.mxu1 %vm373_vm0, %v5125_v54  ;;  %v2925_v39 = vsel %vm373_vm0, %v5125_v54, 0.0 }
 0xe53   : > { %4444 = vmatmul.mubr.msk.f32.vlgmr.msra.gmra.mrb[22].mxu1 %vm373_vm0, %v5127_v21 }
 0xe54   : > { %4450 = vmatprep.mubr.msk.f32.mxu1 %vm1629_vm1, %v3023_v19 }
 0xe55   : > { %4914 = vmatpush3.bf16.xpose.msk.msra.mxu1 %vm5640_vm2, %v4909_v20 }
 0xe5c   : > { %4451 = vmatmul.mubr.msk.f32.vlgmr.msra.gmra.mrb[24].mxu1 %vm1629_vm1, %v3025_v22 }
 0xf26   : > { %v5834_v1 = vpop.f32.mrb[22].mxu1 }
 0xf27   : > { %v5836_v24 = vpop.f32.mrb[23].mxu1 }
 0xf2f   : > { %v4452_v25 = vpop.f32.mrb[24].mxu1 }
 0xf30   : > { %v3104_v26 = vpop.f32.mrb[25].mxu1  ;;  %v3116_v28 = vsel %vm373_vm0, %v4452_v25, -inf }
 0xf31   : > { %3117 = vmax.xlane.f32.xlu1 %v3116_v28  ;;  %v3113_v29 = vsel %vm373_vm0, %v3104_v26, -inf }
 0xf32   : > { %3114 = vmax.xlane.f32.xlu0 %v3113_v29 }
 0xf35   : > { %1924 = vadd.xlane.f32.xlu1 %v1923_v30 }
 0xf39   : > { %1927 = vadd.xlane.f32.xlu1 %v1926_v6 }
 0xf3d   : > { %2126 = vadd.xlane.f32.xlu1 %v2125_v31 }
 0xf41   : > { %2129 = vadd.xlane.f32.xlu1 %v2128_v34 }
 0xf45   : > { %2329 = vadd.xlane.f32.xlu1 %v2328_v35 }
 0xf48   : > { %5096 = vrot.lane.b32.xlu0 %v5646_v57, %s5334_s23  ;;  %v2928_v57 = vsel %vm373_vm0, %v5127_v21, 0.0  ;;  %s5341_s23 = smov 56  }
 0xf49   : > { %2526 = vadd.xlane.f32.xlu1 %v2525_v3 }
 0xf4d   : > { %2529 = vadd.xlane.f32.xlu1 %v2528_v5 }
 0xf51   : > { %2726 = vadd.xlane.f32.xlu1 %v2725_v10 }
 0xf55   : > { %2729 = vadd.xlane.f32.xlu1 %v2728_v13 }
 0xf59   : > { %2926 = vadd.xlane.f32.xlu1 %v2925_v39  ;;  %v3302_v39 = vld [vmem:[%s6017_s5 + $0x28] sm:$0xff] }
 0xf5d   : > { %2929 = vadd.xlane.f32.xlu1 %v2928_v57 }
 0xf67   : > { %2326 = vadd.xlane.f32.xlu0 %v2325_v9  ;;  %v3303_v9 = vld [vmem:[%s6017_s5 + $0x30] sm:$0xff] }
 0xfbe   : > { %v3118_v11 = vpop.xlane.xlu1 %3117 }
 0xfbf   : > { %v3120_v36 = vsub.f32 %v4452_v25, %v3118_v11  ;;  %v3115_v37 = vpop.xlane.xlu0 %3114  ;;  %v3304_v11 = vld [vmem:[%s6017_s5 + $0x38] sm:$0xff] }
 0xfc0   : > { %v3119_v38 = vsub.f32 %v3104_v26, %v3115_v37 }
 0xfc1   : > { %v3123_v40 = vmul.f32 1.442695, %v3120_v36  ;;  %v4931_v36 = vpack.c.bf16 %v3304_v11, %v3303_v9 }
 0xfc2   : > { %v3121_v41 = vmul.f32 1.442695, %v3119_v38  ;;  %v1925_v43 = vpop.xlane.xlu1 %1924 }
 0xfc3   : > { %5128 = vpow2.f32 %v3123_v40  ;;  %v5097_v45 = vpop.permute.xlu0 %5096 }
 0xfc4   : > { %5130 = vpow2.f32 %v3121_v41  ;;  %v5099_v46 = vunpack.i.h.bf16 %v5097_v45  ;;  %v5098_v51 = vunpack.i.l.bf16 %v5097_v45 }
 0xfc5   : > { %5132 = vrcp.f32 %v1925_v43 }
 0xfc6   : > { %v4915_v52 = vpack.c.bf16 %v5099_v46, %v5098_v51  ;;  %v1928_v55 = vpop.xlane.xlu1 %1927 }
 0xfc7   : > { %5134 = vrcp.f32 %v1928_v55 }
 0xfc8   : > { %4916 = vmatprep.subr.bf16.mxu0 %v4915_v52 }
 0xfc9   : > { %4918 = vmatpush3.bf16.msra.mxu0 %v4915_v52 }
 0xfca   : > { %v2127_v58 = vpop.xlane.xlu1 %2126 }
 0xfcb   : > { %5136 = vrcp.f32 %v2127_v58 }
 0xfcd   : > { %v5129_v53 = vpop.eup %5128 }
 0xfce   : > { %v5131_v12 = vpop.eup %5130  ;;  %v2130_v56 = vpop.xlane.xlu1 %2129  ;;  %v3128_v59 = vsel %vm373_vm0, %v5129_v53, 0.0 }
 0xfcf   : > { %3129 = vadd.xlane.f32.xlu0 %v3128_v59  ;;  %4457 = vmatprep.mubr.msk.f32.mxu0 %vm373_vm0, %v5131_v12  ;;  %v3125_v60 = vsel %vm373_vm0, %v5131_v12, 0.0  ;;  %5138 = vrcp.f32 %v2130_v56  ;;  %v5133_v61 = vpop.eup %5132 }
 0xfd0   : > { %3126 = vadd.xlane.f32.xlu1 %v3125_v60  ;;  %4458 = vmatmul.mubr.msk.f32.vlgmr.msra.gmra.mrb[26].mxu0 %vm373_vm0, %v5129_v53  ;;  %v2020_v20 = vmul.f32 %v5133_v61, %v5726_v17 }
 0xfd1   : > { %v5135_v49 = vpop.eup %5134 }
 0xfd2   : > { %v2330_v48 = vpop.xlane.xlu1 %2329  ;;  %v2021_v27 = vmul.f32 %v5135_v49, %v5724_v2 }
 0xfd3   : > { %1733 = vadd.xlane.f32.xlu0 %v1732_v62  ;;  %5140 = vrcp.f32 %v2330_v48 }
 0xfd4   : > { %1730 = vadd.xlane.f32.xlu1 %v1729_v63 }
 0xfd5   : > { %v5137_v54 = vpop.eup %5136 }
 0xfd6   : > { %v2527_v0 = vpop.xlane.xlu1 %2526  ;;  %v2220_v21 = vmul.f32 %v5137_v54, %v5730_v8 }
 0xfd9   : > { %v5139_v19 = vpop.eup %5138 }
 0xfda   : > { %v2530_v4 = vpop.xlane.xlu1 %2529  ;;  %v2221_v25 = vmul.f32 %v5139_v19, %v5728_v15 }
 0xfdb   : > { %5142 = vrcp.f32 %v2530_v4 }
 0xfdd   : > { %v5141_v17 = vpop.eup %5140 }
 0xfde   : > { %v2727_v7 = vpop.xlane.xlu1 %2726  ;;  %v2421_v26 = vmul.f32 %v5141_v17, %v5756_v42 }
 0xfe2   : > { %v2730_v16 = vpop.xlane.xlu1 %2729 }
 0xfe3   : > { %5144 = vrcp.f32 %v2730_v16 }
 0xfe5   : > { %3224 = vrot.lane.b32.xlu1 %v2020_v20, %s5335_s24  ;;  %v5143_v28 = vpop.eup %5142 }
 0xfe6   : > { %v2927_v23 = vpop.xlane.xlu1 %2926  ;;  %v2621_v2 = vmul.f32 %v5143_v28, %v5784_v14 }
 0xfe9   : > { %3226 = vrot.lane.b32.xlu0 %v2021_v27, %s5335_s24  ;;  %3232 = vrot.lane.b32.xlu1 %v2220_v21, %s5336_s26 }
 0xfea   : > { %v2930_v22 = vpop.xlane.xlu1 %2929 }
 0xfeb   : > { %5146 = vrcp.f32 %v2930_v22 }
 0xfed   : > { %3234 = vrot.lane.b32.xlu1 %v2221_v25, %s5336_s26  ;;  %v5145_v8 = vpop.eup %5144  ;;  %s3413_s26 = sshll.u32 %s5624_s25, 4  ;;  %s5224_s25 = sshll.u32 %s5342_s14, 4  ;;  %s5917_s26 = int_to_ptr.vmem [resolvable:$true] %s3413_s26  ;;  %s5225_s25 = int_to_ptr.vmem [resolvable:$false] %s5224_s25 }
 0xfee   : > { %v2821_v30 = vmul.f32 %v5145_v8, %v5812_v47  ;;  %s5220_s29 = scalar_lea.vmem %s5917_s26, 256  ;;  %s5226_s20 = scalar_lea.vmem %s5225_s25, 512 }
 0xfef   : > { %p5221_p12 = scmp.ne.s32.totalorder %s5917_s26, %s5220_s29  ;;  %p5227_p4 = scmp.lt.s32.totalorder %s5917_s26, %s5225_s25 }
 0xff0   : > { %p5228_p7 = scmp.lt.s32.totalorder %s5226_s20, %s5220_s29 }
 0xff1   : > { %3242 = vrot.lane.b32.xlu1 %v2421_v26, %s5337_s10  ;;  %p5222_p2 = pnand %p5221_p12, %p6038_p1 }
 0xff2   : > { %p5229_p8 = por %p5228_p7, %p5227_p4 }
 0xff3   : > { %p5223_p3 = pneg %p5222_p2 }
 0xff4   : > { %v2327_v29 = vpop.xlane.xlu0 %2326 }
 0xff5   : > { %5148 = vrcp.f32 %v2327_v29  ;;  %3250 = vrot.lane.b32.xlu1 %v2621_v2, %s5338_s12  ;;  %v5147_v6 = vpop.eup %5146  ;;  %p5230_p11 = pnand %p5229_p8, %p5223_p3 }
 0xff6   : > { %5150 = vrcp.f32 %v2527_v0  ;;  %v3021_v15 = vmul.f32 %v5147_v6, %v5834_v1  ;;  %v3297_v1 = vld [vmem:[%s6017_s5] sm:$0xff] }
 0xff7   : > { %5152 = vrcp.f32 %v2727_v7 }
 0xff8   : > { %5154 = vrcp.f32 %v2927_v23 }
 0xff9   : > { %3258 = vrot.lane.b32.xlu1 %v2821_v30, %s5339_s13 }
 0xffd   : > { %3266 = vrot.lane.b32.xlu1 %v3021_v15, %s5340_s18 }
 0xfff   : > { %v5149_v42 = vpop.eup %5148 }
0x1000   : > { %v2420_v14 = vmul.f32 %v5149_v42, %v5758_v44  ;;  %v5151_v31 = vpop.eup %5150  ;;  %v3298_v44 = vld [vmem:[%s6017_s5 + $0x8] sm:$0xff] }
0x1001   : > { %v2620_v34 = vmul.f32 %v5151_v31, %v5786_v18  ;;  %v5153_v35 = vpop.eup %5152  ;;  %v3299_v18 = vld [vmem:[%s6017_s5 + $0x10] sm:$0xff]  ;;  %v4919_v10 = vpack.c.bf16 %v3298_v44, %v3297_v1 }
0x1002   : > { %3240 = vrot.lane.b32.xlu0 %v2420_v14, %s5337_s10  ;;  %v2820_v47 = vmul.f32 %v5153_v35, %v5814_v50  ;;  %v5155_v3 = vpop.eup %5154  ;;  %v3300_v50 = vld [vmem:[%s6017_s5 + $0x18] sm:$0xff]  ;;  %s3647_s10 = sshll.u32 %s5411_s9, 8 }
0x1003   : > { %v3020_v5 = vmul.f32 %v5155_v3, %v5836_v24  ;;  %v4923_v13 = vpack.c.bf16 %v3300_v50, %v3299_v18  ;;  %v3301_v24 = vld [vmem:[%s6017_s5 + $0x20] sm:$0xff]  ;;  %4920 = vmatprep.subr.bf16.mxu0 %v4919_v10 }
0x1004   : > { %4922 = vmatpush3.bf16.msra.mxu0 %v4919_v10  ;;  %v4927_v57 = vpack.c.bf16 %v3302_v39, %v3301_v24 }
0x1005   : > { %4924 = vmatprep.subr.bf16.mxu0 %v4923_v13 }
0x1006   : > { %3248 = vrot.lane.b32.xlu0 %v2620_v34, %s5338_s12 }
0x1008   : > { %4926 = vmatpush3.bf16.msra.mxu0 %v4923_v13 }
0x1009   : > { %4928 = vmatprep.subr.bf16.mxu0 %v4927_v57 }
0x100a   : > { %3256 = vrot.lane.b32.xlu0 %v2820_v47, %s5339_s13 }
0x100c   : > { %4930 = vmatpush3.bf16.msra.mxu0 %v4927_v57 }
0x100d   : > { %4932 = vmatprep.subr.bf16.mxu0 %v4931_v36 }
0x100e   : > { %3264 = vrot.lane.b32.xlu0 %v3020_v5, %s5340_s18  ;;  %s5925_s18 = scalar_lea.hbm %s6019_s7, %s3647_s10 }
0x1010   : > { %4934 = vmatpush3.bf16.msra.mxu0 %v4931_v36 }
0x105c   : > { %v3130_v37 = vpop.xlane.xlu0 %3129 }
0x105d   : > { %v3127_v38 = vpop.xlane.xlu1 %3126  ;;  %5156 = vrcp.f32 %v3130_v37 }
0x105e   : > { %5158 = vrcp.f32 %v3127_v38 }
0x1060   : > { %v1734_v53 = vpop.xlane.xlu0 %1733 }
0x1061   : > { %v1731_v52 = vpop.xlane.xlu1 %1730 }
0x1062   : > { %5160 = vrcp.f32 %v1731_v52 }
0x1063   : > { %5162 = vrcp.f32 %v1734_v53 }
0x1064   : > { %v3227_v56 = vpop.permute.xlu0 %3226 }
0x1065   : > { %v3225_v55 = vpop.permute.xlu1 %3224 }
0x1067   : > { %v5157_v40 = vpop.eup %5156 }
0x1068   : > { %v5159_v43 = vpop.eup %5158 }
0x1069   : > { %v3233_v58 = vpop.permute.xlu1 %3232 }
0x106c   : > { %v5161_v63 = vpop.eup %5160 }
0x106d   : > { %v3235_v12 = vpop.permute.xlu1 %3234  ;;  %v5163_v0 = vpop.eup %5162  ;;  %v1818_v4 = vmul.f32 %v5161_v63, %v5688_v33 }
0x106e   : > { %v1819_v61 = vmul.f32 %v5163_v0, %v5686_v32 }
0x106f   : > { %v3278_v49 = vsel %vm1629_vm1, %v1818_v4, %v3225_v55 }
0x1070   : > { %v3279_v20 = vsel %vm1629_vm1, %v1819_v61, %v3227_v56  ;;  %v3280_v23 = vsel %vm373_vm0, %v3278_v49, %v3233_v58 }
0x1071   : > { %v3243_v59 = vpop.permute.xlu1 %3242  ;;  %v3281_v21 = vsel %vm373_vm0, %v3279_v20, %v3235_v12 }
0x1072   : > { %v3284_v22 = vsel %vm3282_vm3, %v3281_v21, %v3243_v59 }
0x1074   : > { %v3241_v60 = vpop.permute.xlu0 %3240 }
0x1075   : > { %v3251_v48 = vpop.permute.xlu1 %3250  ;;  %v3283_v19 = vsel %vm3282_vm3, %v3280_v23, %v3241_v60 }
0x1076   : > { %v3287_v32 = vsel %vm3285_vm4, %v3284_v22, %v3251_v48 }
0x1078   : > { %v3249_v62 = vpop.permute.xlu0 %3248 }
0x1079   : > { %v3259_v7 = vpop.permute.xlu1 %3258  ;;  %v3286_v33 = vsel %vm3285_vm4, %v3283_v19, %v3249_v62 }
0x107a   : > { %v3290_v26 = vsel %vm3288_vm5, %v3287_v32, %v3259_v7 }
0x107c   : > { %v3257_v16 = vpop.permute.xlu0 %3256 }
0x107d   : > { %v3267_v54 = vpop.permute.xlu1 %3266  ;;  %v3289_v25 = vsel %vm3288_vm5, %v3286_v33, %v3257_v16 }
0x107e   : > { %v3293_v8 = vsel %vm3291_vm6, %v3290_v26, %v3267_v54 }
0x1080   : > { %v3265_v27 = vpop.permute.xlu0 %3264 }
0x1081   : > { %v3292_v28 = vsel %vm3291_vm6, %v3289_v25, %v3265_v27 }
0x10a3   : > { %v4459_v41 = vpop.f32.mrb[26].mxu0 }
0x10a4   : > { %v3221_v45 = vmul.f32 %v5157_v40, %v4459_v41  ;;  %v3211_v46 = vpop.f32.mrb[27].mxu0 }
0x10a5   : > { %v3220_v51 = vmul.f32 %v5159_v43, %v3211_v46 }
0x10a6   : > { %3274 = vrot.lane.b32.xlu1 %v3221_v45, %s5341_s23 }
0x10a7   : > { %3272 = vrot.lane.b32.xlu0 %v3220_v51, %s5341_s23 }
0x1118   : > { %v3275_v17 = vpop.permute.xlu1 %3274 }
0x1119   : > { %v3273_v2 = vpop.permute.xlu0 %3272  ;;  %v3296_v30 = vsel %vm3294_vm7, %v3293_v8, %v3275_v17 }
0x111a   : > { %v3295_v29 = vsel %vm3294_vm7, %v3292_v28, %v3273_v2 }
0x111b   : > { %4476 = vmatprep.mubr.msk.f32.mxu0 %vm3310_vm8, %v3295_v29 }
0x111c   : > { %4477 = vmatmul.mubr.msk.f32.vlgmr.msra.gmra.mrb[28].mxu0 %vm3310_vm8, %v3296_v30 }
0x111d   : > { %5233 = shalt.err (!%p5230_p11)
}
0x111e   : > { %s5234_s22 = scalar_lea.hbm %s5925_s18, 256  ;;  %s5238_s13 = scalar_lea.hbm %s6019_s7, 512 }
0x111f   : > { %p5235_p13 = scmp.ne.s32.totalorder %s5925_s18, %s5234_s22  ;;  %p5239_p6 = scmp.lt.u32.totalorder %s5925_s18, %s6019_s7 }
0x1120   : > { %p5240_p9 = scmp.lt.u32.totalorder %s5238_s13, %s5234_s22  ;;  %p5242_p12 = scmp.lt.u32.totalorder %s5234_s22, %s5925_s18 }
0x1121   : > { %p5236_p5 = pnand %p5235_p13, %p6038_p1 }
0x1122   : > { %p5241_p10 = por %p5240_p9, %p5239_p6 }
0x1123   : > { %p5237_p0 = pneg %p5236_p5 }
0x1124   : > { %p5243_p2 = por %p5242_p12, %p5241_p10 }
0x1126   : > { %p5244_p3 = pnand %p5243_p2, %p5237_p0 }
0x1128   : > { %5247 = shalt.err (!%p5244_p3)
}
0x1129   : > { %s5343_s29 = smov 128   ;;  %v3635_v6 = vld [vmem:[%s6018_s6 + $0x5] ss:$0 sm:$0xff]  ;;  %s354_s23 = scalar_lea.vmem [#allocation8], %s3565_s17 }
0x112a   : > { %4956 = dma.vmem_to_hbm [thread:$0]  (%p6038_p1), %s5917_s26, 256, %s5925_s18, %s3395_s19, %s5343_s29, %s5343_s29, %s5335_s24  }
0x112b   : > { %s3429_s12 = sshll.u32 %s354_s23, 4  ;;  %s5966_s26 = scalar_lea.hbm %s6020_s8, %s3647_s10  ;;  %s5959_s12 = int_to_ptr.vmem [resolvable:$true] %s3429_s12 }
0x112c   : > { %s3400_s18 = scalar_lea.sflag [#allocation9], %s5616_s21  ;;  %s5248_s17 = scalar_lea.vmem %s5959_s12, 256 }
0x112d   : > { %p5249_p4 = scmp.ne.s32.totalorder %s5959_s12, %s5248_s17  ;;  %s5344_s19 = smov [#allocation8]  }
0x112e   : > { %s5252_s25 = sshll.u32 %s5344_s19, 4  ;;  %s5253_s25 = int_to_ptr.vmem [resolvable:$false] %s5252_s25 }
0x112f   : > { %p5250_p7 = pnand %p5249_p4, %p6038_p1  ;;  %s5254_s20 = scalar_lea.vmem %s5253_s25, 512 }
0x1130   : > { %p5255_p11 = scmp.lt.s32.totalorder %s5959_s12, %s5253_s25  ;;  %p5256_p13 = scmp.lt.s32.totalorder %s5254_s20, %s5248_s17 }
0x1131   : > { %p5251_p8 = pneg %p5250_p7 }
0x1132   : > { %p5257_p5 = por %p5256_p13, %p5255_p11 }
0x1134   : > { %p5258_p0 = pnand %p5257_p5, %p5251_p8 }
0x11ef   : > { %v4478_v15 = vpop.f32.mrb[28].mxu0 }
0x11f0   : > { %v3389_v42 = vadd.f32 %v4478_v15, %v3635_v6  ;;  %v3383_v14 = vpop.f32.mrb[29].mxu0 }
0x11f1   : > { %v3384_v31 = vadd.f32 %v3635_v6, %v3383_v14 }
0x11f2   : > { %3393 = vst [vmem:[%s354_s23 + $0x8] sm:$0xff] %v3389_v42 }
0x11f3   : > { %3392 = vst [vmem:[%s354_s23] sm:$0xff] %v3384_v31 }
0x11f4   : > { %5261 = shalt.err (!%p5258_p0)
}
0x11f5   : > { %s5262_s9 = scalar_lea.hbm %s5966_s26, 256  ;;  %s5266_s23 = scalar_lea.hbm %s6020_s8, 512 }
0x11f6   : > { %p5263_p6 = scmp.ne.s32.totalorder %s5966_s26, %s5262_s9  ;;  %p5267_p12 = scmp.lt.u32.totalorder %s5966_s26, %s6020_s8 }
0x11f7   : > { %p5268_p2 = scmp.lt.u32.totalorder %s5266_s23, %s5262_s9  ;;  %p5270_p4 = scmp.lt.u32.totalorder %s5262_s9, %s5966_s26 }
0x11f8   : > { %p5264_p9 = pnand %p5263_p6, %p6038_p1 }
0x11f9   : > { %p5269_p3 = por %p5268_p2, %p5267_p12 }
0x11fa   : > { %p5265_p10 = pneg %p5264_p9 }
0x11fb   : > { %p5271_p7 = por %p5270_p4, %p5269_p3 }
0x11fd   : > { %p5272_p8 = pnand %p5271_p7, %p5265_p10 }
0x11ff   : > { %5275 = shalt.err (!%p5272_p8)
}
0x1200   : > { %4957 = dma.vmem_to_hbm [thread:$0]  (%p6038_p1), %s5959_s12, 256, %s5966_s26, %s3400_s18, %s5343_s29, %s5343_s29, %s5335_s24  }
0x1201 PF: > { %p4978_p11 = scmp.ge.s32.totalorder %s5322_s30, 2  ;;  %s3444_s17 = sand.u32 1, %s5310_s27  }
0x1202   : > { %p6039_p13 = scmp.ne.s32.totalorder %s6028_s16, 0  ;;  %s3445_s19 = scalar_lea.sflag [#allocation4], %s3444_s17 }
0x1204   : > { %p4968_p5 = pnand %p4978_p11, %p6039_p13 }
0x1206   : > { %5301 = dma.done.wait (!%p4968_p5), %s3445_s19, 256  }
0x1207   : > { %5303 = vsyncadd (!%p4968_p5), %s3445_s19, 4294967040  ;;  %s3454_s15 = scalar_lea.sflag [#allocation9], %s3444_s17 }
0x1208   : > { %5305 = dma.done.wait (!%p4968_p5), %s3454_s15, 256  }
0x1209   : > { %5307 = vsyncadd (!%p4968_p5), %s3454_s15, 4294967040  ;;  %s6040_s21 = sld [smem:[#allocation14_spill]]  ;;  %s6041_s29 = sld [smem:[#allocation15_spill]] }
0x120a   : > { %p24_p1 = scmp.ge.s32.totalorder %s5415_s11, 4   ;;  %s6042_s27 = smov %s5314_s28 }
0x120b   : > { %s6044_s30 = smov %s5415_s11 }
0x120c   :  { %26 = sbr.rel (!%p24_p1) target bundleno = 7 (0x7), region = 115 }
0x120f   : > { %s6043_s28 = smov %s6040_s21 }
0x1213   :  { %3459 = vsyncpa [#allocation3], 1 }
0x1214   :  { %3461 = vsyncpa [#allocation3 + $0x1], 1 }
0x1215   :  { %3462 = vsyncpa [#allocation6], 1 }
0x1216   :  { %3463 = vsyncpa [#allocation4], 1 }
0x1217   :  { %3465 = vsyncpa [#allocation4 + $0x1], 1 }
0x1218   :  { %3466 = vsyncpa [#allocation9], 1 }
0x1219   :  { %3468 = vsyncpa [#allocation9 + $0x1], 1 }

</bundles_post_ra>
